<compile_context>
chip_gen: v7x
topology: tpu7x:2x2x1
jax: 0.10.0
libtpu: 0.0.40
codegen_flags: <defaults>
</compile_context>

<pallas_src>
import jax
import jax.numpy as jnp
from jax import lax
from jax.experimental import pallas as pl
from jax.experimental.pallas import tpu as pltpu


def _sigmoid(x):
    # tanh-based sigmoid: exact math, identical formulation in kernel and
    # reference so the numerical comparison is tight.
    return 0.5 * (jnp.tanh(0.5 * x) + 1.0)


def bidirectional_lstm_pallas(x_tbi, params):
    """x_tbi: (T, B, in_size) float32.  Returns (T, B, out_size) float32."""
    (wih_t, b_cat, whhf_t, whhb_t, wof_t, wob_t, b_o) = params

    T, B, I = x_tbi.shape
    H = whhf_t.shape[0]
    H4 = 4 * H
    O = b_o.shape[-1]
    TB = T * B

    x_flat = x_tbi.reshape(TB, I)  # fold (seq, batch) rows together

    def kernel(x_ref, wih_ref, b_ref, whhf_ref, whhb_ref,
               wof_ref, wob_ref, bo_ref,
               out_ref,
               gx_ref, hsf_ref, hsb_ref):
        # ---- input projections for all timesteps & BOTH directions as one
        #      (T*B, I) x (I, 8H) matmul; bias already fused per direction.
        xb = x_ref[...].astype(jnp.bfloat16)                        # (T*B, I)
        gx_ref[...] = (jnp.dot(xb, wih_ref[...],
                               preferred_element_type=jnp.float32)
                       + b_ref[...])                                # (T*B, 8H)

        def gates(g, c):
            # PyTorch gate order i, f, g, o within a (B, 4H) block.
            i_g = _sigmoid(g[:, 0 * H:1 * H])
            f_g = _sigmoid(g[:, 1 * H:2 * H])
            g_g = jnp.tanh(g[:, 2 * H:3 * H])
            o_g = _sigmoid(g[:, 3 * H:4 * H])
            c_new = f_g * c + i_g * g_g
            h_new = o_g * jnp.tanh(c_new)
            return h_new, c_new

        z = jnp.zeros((B, H), jnp.float32)

        def step(t, carry):
            # Forward step t and backward step (T-1-t) are independent:
            # their matmuls / activations interleave inside one iteration.
            hf, cf, hb, cb = carry
            tb = T - 1 - t
            rows_f = pl.ds(t * B, B)
            rows_b = pl.ds(tb * B, B)
            gf = gx_ref[rows_f, 0:H4] + jnp.dot(
                hf.astype(jnp.bfloat16), whhf_ref[...],
                preferred_element_type=jnp.float32)
            gb = gx_ref[rows_b, H4:2 * H4] + jnp.dot(
                hb.astype(jnp.bfloat16), whhb_ref[...],
                preferred_element_type=jnp.float32)
            hf_new, cf_new = gates(gf, cf)
            hb_new, cb_new = gates(gb, cb)
            hsf_ref[rows_f, :] = hf_new
            hsb_ref[rows_b, :] = hb_new
            return hf_new, cf_new, hb_new, cb_new

        lax.fori_loop(0, T, step, (z, z, z, z), unroll=True)

        # ---- fused output Linear over all (t, b) rows at once:
        # y = concat(h_fwd, h_bwd) @ W_out^T + b
        #   == h_fwd @ WoF^T + h_bwd @ WoB^T + b
        hf = hsf_ref[...].astype(jnp.bfloat16)                      # (T*B, H)
        hb = hsb_ref[...].astype(jnp.bfloat16)
        out_ref[...] = (jnp.dot(hf, wof_ref[...],
                                preferred_element_type=jnp.float32)
                        + jnp.dot(hb, wob_ref[...],
                                  preferred_element_type=jnp.float32)
                        + bo_ref[...])                              # (T*B, O)

    grid_spec = pltpu.PrefetchScalarGridSpec(
        num_scalar_prefetch=0,
        grid=(1,),
        in_specs=[
            pl.BlockSpec((TB, I), lambda i: (0, 0)),       # x (f32)
            pl.BlockSpec((I, 2 * H4), lambda i: (0, 0)),   # [W_ih_f | W_ih_b]^T (bf16)
            pl.BlockSpec((1, 2 * H4), lambda i: (0, 0)),   # [b_f | b_b] (f32)
            pl.BlockSpec((H, H4), lambda i: (0, 0)),       # W_hh fwd^T (bf16)
            pl.BlockSpec((H, H4), lambda i: (0, 0)),       # W_hh bwd^T (bf16)
            pl.BlockSpec((H, O), lambda i: (0, 0)),        # W_out fwd-half^T (bf16)
            pl.BlockSpec((H, O), lambda i: (0, 0)),        # W_out bwd-half^T (bf16)
            pl.BlockSpec((1, O), lambda i: (0, 0)),        # b_out (f32)
        ],
        out_specs=pl.BlockSpec((TB, O), lambda i: (0, 0)),
        scratch_shapes=[
            pltpu.VMEM((TB, 2 * H4), jnp.float32),   # gx, both directions
            pltpu.VMEM((TB, H), jnp.float32),        # hidden states forward
            pltpu.VMEM((TB, H), jnp.float32),        # hidden states backward
        ],
    )

    y_flat = pl.pallas_call(
        kernel,
        out_shape=jax.ShapeDtypeStruct((TB, O), jnp.float32),
        grid_spec=grid_spec,
        compiler_params=pltpu.CompilerParams(
            dimension_semantics=("arbitrary",)),
    )(x_flat, wih_t, b_cat, whhf_t, whhb_t, wof_t, wob_t, b_o)

    return y_flat.reshape(T, B, O)


def make_params(key, in_size, hidden, out_size):
    """PyTorch-style init, then pre-transposed / pre-fused for the kernel."""
    H4 = 4 * hidden
    ks = jax.random.split(key, 10)
    s = (1.0 / hidden) ** 0.5

    def u(k, shape, scale):
        return jax.random.uniform(k, shape, jnp.float32, -scale, scale)

    # nn.LSTM layout: weight_ih (4H, I), weight_hh (4H, H), biases (4H,);
    # gate order i, f, g, o.
    wih_f = u(ks[0], (H4, in_size), s); whh_f = u(ks[1], (H4, hidden), s)
    bih_f = u(ks[2], (H4,), s);         bhh_f = u(ks[3], (H4,), s)
    wih_b = u(ks[4], (H4, in_size), s); whh_b = u(ks[5], (H4, hidden), s)
    bih_b = u(ks[6], (H4,), s);         bhh_b = u(ks[7], (H4,), s)
    # nn.Linear(2H, out): weight (out, 2H), bias (out,)
    so = (1.0 / (2 * hidden)) ** 0.5
    w_out = u(ks[8], (out_size, 2 * hidden), so)
    b_out = u(ks[9], (out_size,), so)

    wih_cat = jnp.concatenate([wih_f.T, wih_b.T], axis=1)            # (I, 8H)
    b_cat = jnp.concatenate([bih_f + bhh_f, bih_b + bhh_b]).reshape(1, 2 * H4)

    return (
        wih_cat.astype(jnp.bfloat16),                # (I, 8H)
        b_cat,                                       # (1, 8H) f32
        whh_f.T.astype(jnp.bfloat16),                # (H, 4H)
        whh_b.T.astype(jnp.bfloat16),                # (H, 4H)
        w_out[:, :hidden].T.astype(jnp.bfloat16),    # (H, O)  forward half
        w_out[:, hidden:].T.astype(jnp.bfloat16),    # (H, O)  backward half
        b_out.reshape(1, out_size),                  # (1, O) f32
    )


def reference_jax(x_tbi, params):
    """Plain-JAX reference with identical math (incl. bf16 MXU operand casts)."""
    (wih_t, b_cat, whhf_t, whhb_t, wof_t, wob_t, b_o) = params
    T, B, I = x_tbi.shape
    H = whhf_t.shape[0]
    H4 = 4 * H

    x = x_tbi.reshape(T * B, I).astype(jnp.bfloat16)
    gx = jnp.dot(x, wih_t, preferred_element_type=jnp.float32) + b_cat
    gxf = gx[:, :H4].reshape(T, B, H4)
    gxb = gx[:, H4:].reshape(T, B, H4)

    def cell(g_in, h, c, whh_t):
        g = g_in + jnp.dot(h.astype(jnp.bfloat16), whh_t,
                           preferred_element_type=jnp.float32)
        i_g = _sigmoid(g[:, 0 * H:1 * H])
        f_g = _sigmoid(g[:, 1 * H:2 * H])
        g_g = jnp.tanh(g[:, 2 * H:3 * H])
        o_g = _sigmoid(g[:, 3 * H:4 * H])
        c_new = f_g * c + i_g * g_g
        return o_g * jnp.tanh(c_new), c_new

    h = jnp.zeros((B, H), jnp.float32)
    c = jnp.zeros((B, H), jnp.float32)
    hs_f = []
    for t in range(T):
        h, c = cell(gxf[t], h, c, whhf_t)
        hs_f.append(h)

    h = jnp.zeros((B, H), jnp.float32)
    c = jnp.zeros((B, H), jnp.float32)
    hs_b = [None] * T
    for i in range(T):
        t = T - 1 - i
        h, c = cell(gxb[t], h, c, whhb_t)
        hs_b[t] = h

    hf = jnp.stack(hs_f, axis=0).reshape(T * B, H).astype(jnp.bfloat16)
    hb = jnp.stack(hs_b, axis=0).reshape(T * B, H).astype(jnp.bfloat16)
    y = (jnp.dot(hf, wof_t, preferred_element_type=jnp.float32)
         + jnp.dot(hb, wob_t, preferred_element_type=jnp.float32)
         + b_o)
    return y.reshape(T, B, -1)


if __name__ == "__main__":
    SEQ, BATCH, IN_SIZE, HIDDEN, OUT_SIZE = 8, 2, 16, 32, 16   # 4*HIDDEN = 128 lanes

    key = jax.random.PRNGKey(0)
    kx, kp = jax.random.split(key)
    x = jax.random.normal(kx, (SEQ, BATCH, IN_SIZE), jnp.float32)
    params = make_params(kp, IN_SIZE, HIDDEN, OUT_SIZE)

    y = bidirectional_lstm_pallas(x, params)
    y = jax.block_until_ready(y)

    y_ref = reference_jax(x, params)
    assert y.shape == (SEQ, BATCH, OUT_SIZE)
    err = float(jnp.max(jnp.abs(y - y_ref)))
    # bf16 MXU operands with f32 accumulation in both kernel and reference;
    # tolerance covers transcendental / accumulation-order differences.
    assert err < 1e-3, f"max abs error {err}"

    print("KERNEL_OK")
</pallas_src>

<mosaic_0001>
module attributes {stable_mosaic.version = 11 : i64} {
  func.func @kernel(%arg0: i32, %arg1: memref<16x16xf32, #tpu.memory_space<vmem>>, %arg2: memref<16x256xbf16, #tpu.memory_space<vmem>>, %arg3: memref<1x256xf32, #tpu.memory_space<vmem>>, %arg4: memref<32x128xbf16, #tpu.memory_space<vmem>>, %arg5: memref<32x128xbf16, #tpu.memory_space<vmem>>, %arg6: memref<32x16xbf16, #tpu.memory_space<vmem>>, %arg7: memref<32x16xbf16, #tpu.memory_space<vmem>>, %arg8: memref<1x16xf32, #tpu.memory_space<vmem>>, %arg9: memref<16x16xf32, #tpu.memory_space<vmem>>, %arg10: memref<16x256xf32, #tpu.memory_space<vmem>>, %arg11: memref<16x32xf32, #tpu.memory_space<vmem>>, %arg12: memref<16x32xf32, #tpu.memory_space<vmem>>) attributes {dimension_semantics = [#tpu.dimension_semantics<arbitrary>], iteration_bounds = array<i64: 1>, scalar_prefetch = 0 : i64, scratch_operands = 3 : i64, tpu.core_type = #tpu.core_type<tc>, window_params = [{pipeline_mode = #tpu.pipeline_mode<synchronous>, transform_indices = @transform_0, window_bounds = array<i64: 16, 16>}, {pipeline_mode = #tpu.pipeline_mode<synchronous>, transform_indices = @transform_1, window_bounds = array<i64: 16, 256>}, {pipeline_mode = #tpu.pipeline_mode<synchronous>, transform_indices = @transform_2, window_bounds = array<i64: 1, 256>}, {pipeline_mode = #tpu.pipeline_mode<synchronous>, transform_indices = @transform_3, window_bounds = array<i64: 32, 128>}, {pipeline_mode = #tpu.pipeline_mode<synchronous>, transform_indices = @transform_4, window_bounds = array<i64: 32, 128>}, {pipeline_mode = #tpu.pipeline_mode<synchronous>, transform_indices = @transform_5, window_bounds = array<i64: 32, 16>}, {pipeline_mode = #tpu.pipeline_mode<synchronous>, transform_indices = @transform_6, window_bounds = array<i64: 32, 16>}, {pipeline_mode = #tpu.pipeline_mode<synchronous>, transform_indices = @transform_7, window_bounds = array<i64: 1, 16>}, {pipeline_mode = #tpu.pipeline_mode<synchronous>, transform_indices = @transform_8, window_bounds = array<i64: 16, 16>}]} {
    %c0 = arith.constant 0 : index
    %c0_0 = arith.constant 0 : index
    %0 = vector.load %arg1[%c0, %c0_0] : memref<16x16xf32, #tpu.memory_space<vmem>>, vector<16x16xf32>
    %1 = arith.truncf %0 : vector<16x16xf32> to vector<16x16xbf16>
    %c0_1 = arith.constant 0 : index
    %c0_2 = arith.constant 0 : index
    %2 = vector.load %arg2[%c0_1, %c0_2] : memref<16x256xbf16, #tpu.memory_space<vmem>>, vector<16x256xbf16>
    %cst = arith.constant dense<0.000000e+00> : vector<16x256xf32>
    %3 = tpu.matmul %1, %2, %cst {dimension_numbers = #tpu.dot_dimension_numbers<[1], [0], [0], [1], [0, 0, 1, 1], [], []>} : vector<16x16xbf16>, vector<16x256xbf16>, vector<16x256xf32> -> vector<16x256xf32>
    %c0_3 = arith.constant 0 : index
    %c0_4 = arith.constant 0 : index
    %4 = vector.load %arg3[%c0_3, %c0_4] : memref<1x256xf32, #tpu.memory_space<vmem>>, vector<1x256xf32>
    %5 = vector.broadcast %4 : vector<1x256xf32> to vector<16x256xf32>
    %6 = arith.addf %3, %5 : vector<16x256xf32>
    %c0_5 = arith.constant 0 : index
    %c0_6 = arith.constant 0 : index
    %7 = vector.load %arg10[%c0_5, %c0_6] : memref<16x256xf32, #tpu.memory_space<vmem>>, vector<16x256xf32>
    tpu.vector_store %arg10[%c0_5, %c0_6], %6 {strides = array<i32>} : memref<16x256xf32, #tpu.memory_space<vmem>>, vector<16x256xf32>,
    %cst_7 = arith.constant 0.000000e+00 : f32
    %8 = vector.broadcast %cst_7 : f32 to vector<2x32xf32>
    %c0_i32 = arith.constant 0 : i32
    %c7_i32 = arith.constant 7 : i32
    %9 = arith.subi %c7_i32, %c0_i32 : i32
    %c2_i32 = arith.constant 2 : i32
    %10 = arith.muli %c0_i32, %c2_i32 : i32
    %c2_i32_8 = arith.constant 2 : i32
    %11 = arith.muli %9, %c2_i32_8 : i32
    %12 = arith.index_cast %10 : i32 to index
    %c0_9 = arith.constant 0 : index
    %13 = vector.load %arg10[%12, %c0_9] : memref<16x256xf32, #tpu.memory_space<vmem>>, vector<2x128xf32>
    %14 = arith.truncf %8 : vector<2x32xf32> to vector<2x32xbf16>
    %c0_10 = arith.constant 0 : index
    %c0_11 = arith.constant 0 : index
    %15 = vector.load %arg4[%c0_10, %c0_11] : memref<32x128xbf16, #tpu.memory_space<vmem>>, vector<32x128xbf16>
    %cst_12 = arith.constant dense<0.000000e+00> : vector<2x128xf32>
    %16 = tpu.matmul %14, %15, %cst_12 {dimension_numbers = #tpu.dot_dimension_numbers<[1], [0], [0], [1], [0, 0, 1, 1], [], []>} : vector<2x32xbf16>, vector<32x128xbf16>, vector<2x128xf32> -> vector<2x128xf32>
    %17 = arith.addf %13, %16 : vector<2x128xf32>
    %18 = arith.index_cast %11 : i32 to index
    %c128 = arith.constant 128 : index
    %19 = vector.load %arg10[%18, %c128] : memref<16x256xf32, #tpu.memory_space<vmem>>, vector<2x128xf32>
    %20 = arith.truncf %8 : vector<2x32xf32> to vector<2x32xbf16>
    %c0_13 = arith.constant 0 : index
    %c0_14 = arith.constant 0 : index
    %21 = vector.load %arg5[%c0_13, %c0_14] : memref<32x128xbf16, #tpu.memory_space<vmem>>, vector<32x128xbf16>
    %cst_15 = arith.constant dense<0.000000e+00> : vector<2x128xf32>
    %22 = tpu.matmul %20, %21, %cst_15 {dimension_numbers = #tpu.dot_dimension_numbers<[1], [0], [0], [1], [0, 0, 1, 1], [], []>} : vector<2x32xbf16>, vector<32x128xbf16>, vector<2x128xf32> -> vector<2x128xf32>
    %23 = arith.addf %19, %22 : vector<2x128xf32>
    %24 = vector.extract_strided_slice %17 {offsets = [0, 0], sizes = [2, 32], strides = [1, 1]} : vector<2x128xf32> to vector<2x32xf32>
    %cst_16 = arith.constant 5.000000e-01 : f32
    %25 = vector.broadcast %cst_16 : f32 to vector<2x32xf32>
    %26 = arith.mulf %25, %24 : vector<2x32xf32>
    %27 = math.tanh %26 : vector<2x32xf32>
    %cst_17 = arith.constant 1.000000e+00 : f32
    %28 = vector.broadcast %cst_17 : f32 to vector<2x32xf32>
    %29 = arith.addf %27, %28 : vector<2x32xf32>
    %cst_18 = arith.constant 5.000000e-01 : f32
    %30 = vector.broadcast %cst_18 : f32 to vector<2x32xf32>
    %31 = arith.mulf %30, %29 : vector<2x32xf32>
    %32 = vector.extract_strided_slice %17 {offsets = [0, 32], sizes = [2, 32], strides = [1, 1]} : vector<2x128xf32> to vector<2x32xf32>
    %cst_19 = arith.constant 5.000000e-01 : f32
    %33 = vector.broadcast %cst_19 : f32 to vector<2x32xf32>
    %34 = arith.mulf %33, %32 : vector<2x32xf32>
    %35 = math.tanh %34 : vector<2x32xf32>
    %cst_20 = arith.constant 1.000000e+00 : f32
    %36 = vector.broadcast %cst_20 : f32 to vector<2x32xf32>
    %37 = arith.addf %35, %36 : vector<2x32xf32>
    %cst_21 = arith.constant 5.000000e-01 : f32
    %38 = vector.broadcast %cst_21 : f32 to vector<2x32xf32>
    %39 = arith.mulf %38, %37 : vector<2x32xf32>
    %40 = vector.extract_strided_slice %17 {offsets = [0, 64], sizes = [2, 32], strides = [1, 1]} : vector<2x128xf32> to vector<2x32xf32>
    %41 = math.tanh %40 : vector<2x32xf32>
    %42 = vector.extract_strided_slice %17 {offsets = [0, 96], sizes = [2, 32], strides = [1, 1]} : vector<2x128xf32> to vector<2x32xf32>
    %cst_22 = arith.constant 5.000000e-01 : f32
    %43 = vector.broadcast %cst_22 : f32 to vector<2x32xf32>
    %44 = arith.mulf %43, %42 : vector<2x32xf32>
    %45 = math.tanh %44 : vector<2x32xf32>
    %cst_23 = arith.constant 1.000000e+00 : f32
    %46 = vector.broadcast %cst_23 : f32 to vector<2x32xf32>
    %47 = arith.addf %45, %46 : vector<2x32xf32>
    %cst_24 = arith.constant 5.000000e-01 : f32
    %48 = vector.broadcast %cst_24 : f32 to vector<2x32xf32>
    %49 = arith.mulf %48, %47 : vector<2x32xf32>
    %50 = arith.mulf %39, %8 : vector<2x32xf32>
    %51 = arith.mulf %31, %41 : vector<2x32xf32>
    %52 = arith.addf %50, %51 : vector<2x32xf32>
    %53 = math.tanh %52 : vector<2x32xf32>
    %54 = arith.mulf %49, %53 : vector<2x32xf32>
    %55 = vector.extract_strided_slice %23 {offsets = [0, 0], sizes = [2, 32], strides = [1, 1]} : vector<2x128xf32> to vector<2x32xf32>
    %cst_25 = arith.constant 5.000000e-01 : f32
    %56 = vector.broadcast %cst_25 : f32 to vector<2x32xf32>
    %57 = arith.mulf %56, %55 : vector<2x32xf32>
    %58 = math.tanh %57 : vector<2x32xf32>
    %cst_26 = arith.constant 1.000000e+00 : f32
    %59 = vector.broadcast %cst_26 : f32 to vector<2x32xf32>
    %60 = arith.addf %58, %59 : vector<2x32xf32>
    %cst_27 = arith.constant 5.000000e-01 : f32
    %61 = vector.broadcast %cst_27 : f32 to vector<2x32xf32>
    %62 = arith.mulf %61, %60 : vector<2x32xf32>
    %63 = vector.extract_strided_slice %23 {offsets = [0, 32], sizes = [2, 32], strides = [1, 1]} : vector<2x128xf32> to vector<2x32xf32>
    %cst_28 = arith.constant 5.000000e-01 : f32
    %64 = vector.broadcast %cst_28 : f32 to vector<2x32xf32>
    %65 = arith.mulf %64, %63 : vector<2x32xf32>
    %66 = math.tanh %65 : vector<2x32xf32>
    %cst_29 = arith.constant 1.000000e+00 : f32
    %67 = vector.broadcast %cst_29 : f32 to vector<2x32xf32>
    %68 = arith.addf %66, %67 : vector<2x32xf32>
    %cst_30 = arith.constant 5.000000e-01 : f32
    %69 = vector.broadcast %cst_30 : f32 to vector<2x32xf32>
    %70 = arith.mulf %69, %68 : vector<2x32xf32>
    %71 = vector.extract_strided_slice %23 {offsets = [0, 64], sizes = [2, 32], strides = [1, 1]} : vector<2x128xf32> to vector<2x32xf32>
    %72 = math.tanh %71 : vector<2x32xf32>
    %73 = vector.extract_strided_slice %23 {offsets = [0, 96], sizes = [2, 32], strides = [1, 1]} : vector<2x128xf32> to vector<2x32xf32>
    %cst_31 = arith.constant 5.000000e-01 : f32
    %74 = vector.broadcast %cst_31 : f32 to vector<2x32xf32>
    %75 = arith.mulf %74, %73 : vector<2x32xf32>
    %76 = math.tanh %75 : vector<2x32xf32>
    %cst_32 = arith.constant 1.000000e+00 : f32
    %77 = vector.broadcast %cst_32 : f32 to vector<2x32xf32>
    %78 = arith.addf %76, %77 : vector<2x32xf32>
    %cst_33 = arith.constant 5.000000e-01 : f32
    %79 = vector.broadcast %cst_33 : f32 to vector<2x32xf32>
    %80 = arith.mulf %79, %78 : vector<2x32xf32>
    %81 = arith.mulf %70, %8 : vector<2x32xf32>
    %82 = arith.mulf %62, %72 : vector<2x32xf32>
    %83 = arith.addf %81, %82 : vector<2x32xf32>
    %84 = math.tanh %83 : vector<2x32xf32>
    %85 = arith.mulf %80, %84 : vector<2x32xf32>
    %86 = arith.index_cast %10 : i32 to index
    %c0_34 = arith.constant 0 : index
    %87 = vector.load %arg11[%86, %c0_34] : memref<16x32xf32, #tpu.memory_space<vmem>>, vector<2x32xf32>
    tpu.vector_store %arg11[%86, %c0_34], %54 {strides = array<i32>} : memref<16x32xf32, #tpu.memory_space<vmem>>, vector<2x32xf32>,
    %88 = arith.index_cast %11 : i32 to index
    %c0_35 = arith.constant 0 : index
    %89 = vector.load %arg12[%88, %c0_35] : memref<16x32xf32, #tpu.memory_space<vmem>>, vector<2x32xf32>
    tpu.vector_store %arg12[%88, %c0_35], %85 {strides = array<i32>} : memref<16x32xf32, #tpu.memory_space<vmem>>, vector<2x32xf32>,
    %c1_i32 = arith.constant 1 : i32
    %c7_i32_36 = arith.constant 7 : i32
    %90 = arith.subi %c7_i32_36, %c1_i32 : i32
    %c2_i32_37 = arith.constant 2 : i32
    %91 = arith.muli %c1_i32, %c2_i32_37 : i32
    %c2_i32_38 = arith.constant 2 : i32
    %92 = arith.muli %90, %c2_i32_38 : i32
    %93 = arith.index_cast %91 : i32 to index
    %c0_39 = arith.constant 0 : index
    %94 = vector.load %arg10[%93, %c0_39] : memref<16x256xf32, #tpu.memory_space<vmem>>, vector<2x128xf32>
    %95 = arith.truncf %54 : vector<2x32xf32> to vector<2x32xbf16>
    %c0_40 = arith.constant 0 : index
    %c0_41 = arith.constant 0 : index
    %96 = vector.load %arg4[%c0_40, %c0_41] : memref<32x128xbf16, #tpu.memory_space<vmem>>, vector<32x128xbf16>
    %cst_42 = arith.constant dense<0.000000e+00> : vector<2x128xf32>
    %97 = tpu.matmul %95, %96, %cst_42 {dimension_numbers = #tpu.dot_dimension_numbers<[1], [0], [0], [1], [0, 0, 1, 1], [], []>} : vector<2x32xbf16>, vector<32x128xbf16>, vector<2x128xf32> -> vector<2x128xf32>
    %98 = arith.addf %94, %97 : vector<2x128xf32>
    %99 = arith.index_cast %92 : i32 to index
    %c128_43 = arith.constant 128 : index
    %100 = vector.load %arg10[%99, %c128_43] : memref<16x256xf32, #tpu.memory_space<vmem>>, vector<2x128xf32>
    %101 = arith.truncf %85 : vector<2x32xf32> to vector<2x32xbf16>
    %c0_44 = arith.constant 0 : index
    %c0_45 = arith.constant 0 : index
    %102 = vector.load %arg5[%c0_44, %c0_45] : memref<32x128xbf16, #tpu.memory_space<vmem>>, vector<32x128xbf16>
    %cst_46 = arith.constant dense<0.000000e+00> : vector<2x128xf32>
    %103 = tpu.matmul %101, %102, %cst_46 {dimension_numbers = #tpu.dot_dimension_numbers<[1], [0], [0], [1], [0, 0, 1, 1], [], []>} : vector<2x32xbf16>, vector<32x128xbf16>, vector<2x128xf32> -> vector<2x128xf32>
    %104 = arith.addf %100, %103 : vector<2x128xf32>
    %105 = vector.extract_strided_slice %98 {offsets = [0, 0], sizes = [2, 32], strides = [1, 1]} : vector<2x128xf32> to vector<2x32xf32>
    %cst_47 = arith.constant 5.000000e-01 : f32
    %106 = vector.broadcast %cst_47 : f32 to vector<2x32xf32>
    %107 = arith.mulf %106, %105 : vector<2x32xf32>
    %108 = math.tanh %107 : vector<2x32xf32>
    %cst_48 = arith.constant 1.000000e+00 : f32
    %109 = vector.broadcast %cst_48 : f32 to vector<2x32xf32>
    %110 = arith.addf %108, %109 : vector<2x32xf32>
    %cst_49 = arith.constant 5.000000e-01 : f32
    %111 = vector.broadcast %cst_49 : f32 to vector<2x32xf32>
    %112 = arith.mulf %111, %110 : vector<2x32xf32>
    %113 = vector.extract_strided_slice %98 {offsets = [0, 32], sizes = [2, 32], strides = [1, 1]} : vector<2x128xf32> to vector<2x32xf32>
    %cst_50 = arith.constant 5.000000e-01 : f32
    %114 = vector.broadcast %cst_50 : f32 to vector<2x32xf32>
    %115 = arith.mulf %114, %113 : vector<2x32xf32>
    %116 = math.tanh %115 : vector<2x32xf32>
    %cst_51 = arith.constant 1.000000e+00 : f32
    %117 = vector.broadcast %cst_51 : f32 to vector<2x32xf32>
    %118 = arith.addf %116, %117 : vector<2x32xf32>
    %cst_52 = arith.constant 5.000000e-01 : f32
    %119 = vector.broadcast %cst_52 : f32 to vector<2x32xf32>
    %120 = arith.mulf %119, %118 : vector<2x32xf32>
    %121 = vector.extract_strided_slice %98 {offsets = [0, 64], sizes = [2, 32], strides = [1, 1]} : vector<2x128xf32> to vector<2x32xf32>
    %122 = math.tanh %121 : vector<2x32xf32>
    %123 = vector.extract_strided_slice %98 {offsets = [0, 96], sizes = [2, 32], strides = [1, 1]} : vector<2x128xf32> to vector<2x32xf32>
    %cst_53 = arith.constant 5.000000e-01 : f32
    %124 = vector.broadcast %cst_53 : f32 to vector<2x32xf32>
    %125 = arith.mulf %124, %123 : vector<2x32xf32>
    %126 = math.tanh %125 : vector<2x32xf32>
    %cst_54 = arith.constant 1.000000e+00 : f32
    %127 = vector.broadcast %cst_54 : f32 to vector<2x32xf32>
    %128 = arith.addf %126, %127 : vector<2x32xf32>
    %cst_55 = arith.constant 5.000000e-01 : f32
    %129 = vector.broadcast %cst_55 : f32 to vector<2x32xf32>
    %130 = arith.mulf %129, %128 : vector<2x32xf32>
    %131 = arith.mulf %120, %52 : vector<2x32xf32>
    %132 = arith.mulf %112, %122 : vector<2x32xf32>
    %133 = arith.addf %131, %132 : vector<2x32xf32>
    %134 = math.tanh %133 : vector<2x32xf32>
    %135 = arith.mulf %130, %134 : vector<2x32xf32>
    %136 = vector.extract_strided_slice %104 {offsets = [0, 0], sizes = [2, 32], strides = [1, 1]} : vector<2x128xf32> to vector<2x32xf32>
    %cst_56 = arith.constant 5.000000e-01 : f32
    %137 = vector.broadcast %cst_56 : f32 to vector<2x32xf32>
    %138 = arith.mulf %137, %136 : vector<2x32xf32>
    %139 = math.tanh %138 : vector<2x32xf32>
    %cst_57 = arith.constant 1.000000e+00 : f32
    %140 = vector.broadcast %cst_57 : f32 to vector<2x32xf32>
    %141 = arith.addf %139, %140 : vector<2x32xf32>
    %cst_58 = arith.constant 5.000000e-01 : f32
    %142 = vector.broadcast %cst_58 : f32 to vector<2x32xf32>
    %143 = arith.mulf %142, %141 : vector<2x32xf32>
    %144 = vector.extract_strided_slice %104 {offsets = [0, 32], sizes = [2, 32], strides = [1, 1]} : vector<2x128xf32> to vector<2x32xf32>
    %cst_59 = arith.constant 5.000000e-01 : f32
    %145 = vector.broadcast %cst_59 : f32 to vector<2x32xf32>
    %146 = arith.mulf %145, %144 : vector<2x32xf32>
    %147 = math.tanh %146 : vector<2x32xf32>
    %cst_60 = arith.constant 1.000000e+00 : f32
    %148 = vector.broadcast %cst_60 : f32 to vector<2x32xf32>
    %149 = arith.addf %147, %148 : vector<2x32xf32>
    %cst_61 = arith.constant 5.000000e-01 : f32
    %150 = vector.broadcast %cst_61 : f32 to vector<2x32xf32>
    %151 = arith.mulf %150, %149 : vector<2x32xf32>
    %152 = vector.extract_strided_slice %104 {offsets = [0, 64], sizes = [2, 32], strides = [1, 1]} : vector<2x128xf32> to vector<2x32xf32>
    %153 = math.tanh %152 : vector<2x32xf32>
    %154 = vector.extract_strided_slice %104 {offsets = [0, 96], sizes = [2, 32], strides = [1, 1]} : vector<2x128xf32> to vector<2x32xf32>
    %cst_62 = arith.constant 5.000000e-01 : f32
    %155 = vector.broadcast %cst_62 : f32 to vector<2x32xf32>
    %156 = arith.mulf %155, %154 : vector<2x32xf32>
    %157 = math.tanh %156 : vector<2x32xf32>
    %cst_63 = arith.constant 1.000000e+00 : f32
    %158 = vector.broadcast %cst_63 : f32 to vector<2x32xf32>
    %159 = arith.addf %157, %158 : vector<2x32xf32>
    %cst_64 = arith.constant 5.000000e-01 : f32
    %160 = vector.broadcast %cst_64 : f32 to vector<2x32xf32>
    %161 = arith.mulf %160, %159 : vector<2x32xf32>
    %162 = arith.mulf %151, %83 : vector<2x32xf32>
    %163 = arith.mulf %143, %153 : vector<2x32xf32>
    %164 = arith.addf %162, %163 : vector<2x32xf32>
    %165 = math.tanh %164 : vector<2x32xf32>
    %166 = arith.mulf %161, %165 : vector<2x32xf32>
    %167 = arith.index_cast %91 : i32 to index
    %c0_65 = arith.constant 0 : index
    %168 = vector.load %arg11[%167, %c0_65] : memref<16x32xf32, #tpu.memory_space<vmem>>, vector<2x32xf32>
    tpu.vector_store %arg11[%167, %c0_65], %135 {strides = array<i32>} : memref<16x32xf32, #tpu.memory_space<vmem>>, vector<2x32xf32>,
    %169 = arith.index_cast %92 : i32 to index
    %c0_66 = arith.constant 0 : index
    %170 = vector.load %arg12[%169, %c0_66] : memref<16x32xf32, #tpu.memory_space<vmem>>, vector<2x32xf32>
    tpu.vector_store %arg12[%169, %c0_66], %166 {strides = array<i32>} : memref<16x32xf32, #tpu.memory_space<vmem>>, vector<2x32xf32>,
    %c2_i32_67 = arith.constant 2 : i32
    %c7_i32_68 = arith.constant 7 : i32
    %171 = arith.subi %c7_i32_68, %c2_i32_67 : i32
    %c2_i32_69 = arith.constant 2 : i32
    %172 = arith.muli %c2_i32_67, %c2_i32_69 : i32
    %c2_i32_70 = arith.constant 2 : i32
    %173 = arith.muli %171, %c2_i32_70 : i32
    %174 = arith.index_cast %172 : i32 to index
    %c0_71 = arith.constant 0 : index
    %175 = vector.load %arg10[%174, %c0_71] : memref<16x256xf32, #tpu.memory_space<vmem>>, vector<2x128xf32>
    %176 = arith.truncf %135 : vector<2x32xf32> to vector<2x32xbf16>
    %c0_72 = arith.constant 0 : index
    %c0_73 = arith.constant 0 : index
    %177 = vector.load %arg4[%c0_72, %c0_73] : memref<32x128xbf16, #tpu.memory_space<vmem>>, vector<32x128xbf16>
    %cst_74 = arith.constant dense<0.000000e+00> : vector<2x128xf32>
    %178 = tpu.matmul %176, %177, %cst_74 {dimension_numbers = #tpu.dot_dimension_numbers<[1], [0], [0], [1], [0, 0, 1, 1], [], []>} : vector<2x32xbf16>, vector<32x128xbf16>, vector<2x128xf32> -> vector<2x128xf32>
    %179 = arith.addf %175, %178 : vector<2x128xf32>
    %180 = arith.index_cast %173 : i32 to index
    %c128_75 = arith.constant 128 : index
    %181 = vector.load %arg10[%180, %c128_75] : memref<16x256xf32, #tpu.memory_space<vmem>>, vector<2x128xf32>
    %182 = arith.truncf %166 : vector<2x32xf32> to vector<2x32xbf16>
    %c0_76 = arith.constant 0 : index
    %c0_77 = arith.constant 0 : index
    %183 = vector.load %arg5[%c0_76, %c0_77] : memref<32x128xbf16, #tpu.memory_space<vmem>>, vector<32x128xbf16>
    %cst_78 = arith.constant dense<0.000000e+00> : vector<2x128xf32>
    %184 = tpu.matmul %182, %183, %cst_78 {dimension_numbers = #tpu.dot_dimension_numbers<[1], [0], [0], [1], [0, 0, 1, 1], [], []>} : vector<2x32xbf16>, vector<32x128xbf16>, vector<2x128xf32> -> vector<2x128xf32>
    %185 = arith.addf %181, %184 : vector<2x128xf32>
    %186 = vector.extract_strided_slice %179 {offsets = [0, 0], sizes = [2, 32], strides = [1, 1]} : vector<2x128xf32> to vector<2x32xf32>
    %cst_79 = arith.constant 5.000000e-01 : f32
    %187 = vector.broadcast %cst_79 : f32 to vector<2x32xf32>
    %188 = arith.mulf %187, %186 : vector<2x32xf32>
    %189 = math.tanh %188 : vector<2x32xf32>
    %cst_80 = arith.constant 1.000000e+00 : f32
    %190 = vector.broadcast %cst_80 : f32 to vector<2x32xf32>
    %191 = arith.addf %189, %190 : vector<2x32xf32>
    %cst_81 = arith.constant 5.000000e-01 : f32
    %192 = vector.broadcast %cst_81 : f32 to vector<2x32xf32>
    %193 = arith.mulf %192, %191 : vector<2x32xf32>
    %194 = vector.extract_strided_slice %179 {offsets = [0, 32], sizes = [2, 32], strides = [1, 1]} : vector<2x128xf32> to vector<2x32xf32>
    %cst_82 = arith.constant 5.000000e-01 : f32
    %195 = vector.broadcast %cst_82 : f32 to vector<2x32xf32>
    %196 = arith.mulf %195, %194 : vector<2x32xf32>
    %197 = math.tanh %196 : vector<2x32xf32>
    %cst_83 = arith.constant 1.000000e+00 : f32
    %198 = vector.broadcast %cst_83 : f32 to vector<2x32xf32>
    %199 = arith.addf %197, %198 : vector<2x32xf32>
    %cst_84 = arith.constant 5.000000e-01 : f32
    %200 = vector.broadcast %cst_84 : f32 to vector<2x32xf32>
    %201 = arith.mulf %200, %199 : vector<2x32xf32>
    %202 = vector.extract_strided_slice %179 {offsets = [0, 64], sizes = [2, 32], strides = [1, 1]} : vector<2x128xf32> to vector<2x32xf32>
    %203 = math.tanh %202 : vector<2x32xf32>
    %204 = vector.extract_strided_slice %179 {offsets = [0, 96], sizes = [2, 32], strides = [1, 1]} : vector<2x128xf32> to vector<2x32xf32>
    %cst_85 = arith.constant 5.000000e-01 : f32
    %205 = vector.broadcast %cst_85 : f32 to vector<2x32xf32>
    %206 = arith.mulf %205, %204 : vector<2x32xf32>
    %207 = math.tanh %206 : vector<2x32xf32>
    %cst_86 = arith.constant 1.000000e+00 : f32
    %208 = vector.broadcast %cst_86 : f32 to vector<2x32xf32>
    %209 = arith.addf %207, %208 : vector<2x32xf32>
    %cst_87 = arith.constant 5.000000e-01 : f32
    %210 = vector.broadcast %cst_87 : f32 to vector<2x32xf32>
    %211 = arith.mulf %210, %209 : vector<2x32xf32>
    %212 = arith.mulf %201, %133 : vector<2x32xf32>
    %213 = arith.mulf %193, %203 : vector<2x32xf32>
    %214 = arith.addf %212, %213 : vector<2x32xf32>
    %215 = math.tanh %214 : vector<2x32xf32>
    %216 = arith.mulf %211, %215 : vector<2x32xf32>
    %217 = vector.extract_strided_slice %185 {offsets = [0, 0], sizes = [2, 32], strides = [1, 1]} : vector<2x128xf32> to vector<2x32xf32>
    %cst_88 = arith.constant 5.000000e-01 : f32
    %218 = vector.broadcast %cst_88 : f32 to vector<2x32xf32>
    %219 = arith.mulf %218, %217 : vector<2x32xf32>
    %220 = math.tanh %219 : vector<2x32xf32>
    %cst_89 = arith.constant 1.000000e+00 : f32
    %221 = vector.broadcast %cst_89 : f32 to vector<2x32xf32>
    %222 = arith.addf %220, %221 : vector<2x32xf32>
    %cst_90 = arith.constant 5.000000e-01 : f32
    %223 = vector.broadcast %cst_90 : f32 to vector<2x32xf32>
    %224 = arith.mulf %223, %222 : vector<2x32xf32>
    %225 = vector.extract_strided_slice %185 {offsets = [0, 32], sizes = [2, 32], strides = [1, 1]} : vector<2x128xf32> to vector<2x32xf32>
    %cst_91 = arith.constant 5.000000e-01 : f32
    %226 = vector.broadcast %cst_91 : f32 to vector<2x32xf32>
    %227 = arith.mulf %226, %225 : vector<2x32xf32>
    %228 = math.tanh %227 : vector<2x32xf32>
    %cst_92 = arith.constant 1.000000e+00 : f32
    %229 = vector.broadcast %cst_92 : f32 to vector<2x32xf32>
    %230 = arith.addf %228, %229 : vector<2x32xf32>
    %cst_93 = arith.constant 5.000000e-01 : f32
    %231 = vector.broadcast %cst_93 : f32 to vector<2x32xf32>
    %232 = arith.mulf %231, %230 : vector<2x32xf32>
    %233 = vector.extract_strided_slice %185 {offsets = [0, 64], sizes = [2, 32], strides = [1, 1]} : vector<2x128xf32> to vector<2x32xf32>
    %234 = math.tanh %233 : vector<2x32xf32>
    %235 = vector.extract_strided_slice %185 {offsets = [0, 96], sizes = [2, 32], strides = [1, 1]} : vector<2x128xf32> to vector<2x32xf32>
    %cst_94 = arith.constant 5.000000e-01 : f32
    %236 = vector.broadcast %cst_94 : f32 to vector<2x32xf32>
    %237 = arith.mulf %236, %235 : vector<2x32xf32>
    %238 = math.tanh %237 : vector<2x32xf32>
    %cst_95 = arith.constant 1.000000e+00 : f32
    %239 = vector.broadcast %cst_95 : f32 to vector<2x32xf32>
    %240 = arith.addf %238, %239 : vector<2x32xf32>
    %cst_96 = arith.constant 5.000000e-01 : f32
    %241 = vector.broadcast %cst_96 : f32 to vector<2x32xf32>
    %242 = arith.mulf %241, %240 : vector<2x32xf32>
    %243 = arith.mulf %232, %164 : vector<2x32xf32>
    %244 = arith.mulf %224, %234 : vector<2x32xf32>
    %245 = arith.addf %243, %244 : vector<2x32xf32>
    %246 = math.tanh %245 : vector<2x32xf32>
    %247 = arith.mulf %242, %246 : vector<2x32xf32>
    %248 = arith.index_cast %172 : i32 to index
    %c0_97 = arith.constant 0 : index
    %249 = vector.load %arg11[%248, %c0_97] : memref<16x32xf32, #tpu.memory_space<vmem>>, vector<2x32xf32>
    tpu.vector_store %arg11[%248, %c0_97], %216 {strides = array<i32>} : memref<16x32xf32, #tpu.memory_space<vmem>>, vector<2x32xf32>,
    %250 = arith.index_cast %173 : i32 to index
    %c0_98 = arith.constant 0 : index
    %251 = vector.load %arg12[%250, %c0_98] : memref<16x32xf32, #tpu.memory_space<vmem>>, vector<2x32xf32>
    tpu.vector_store %arg12[%250, %c0_98], %247 {strides = array<i32>} : memref<16x32xf32, #tpu.memory_space<vmem>>, vector<2x32xf32>,
    %c3_i32 = arith.constant 3 : i32
    %c7_i32_99 = arith.constant 7 : i32
    %252 = arith.subi %c7_i32_99, %c3_i32 : i32
    %c2_i32_100 = arith.constant 2 : i32
    %253 = arith.muli %c3_i32, %c2_i32_100 : i32
    %c2_i32_101 = arith.constant 2 : i32
    %254 = arith.muli %252, %c2_i32_101 : i32
    %255 = arith.index_cast %253 : i32 to index
    %c0_102 = arith.constant 0 : index
    %256 = vector.load %arg10[%255, %c0_102] : memref<16x256xf32, #tpu.memory_space<vmem>>, vector<2x128xf32>
    %257 = arith.truncf %216 : vector<2x32xf32> to vector<2x32xbf16>
    %c0_103 = arith.constant 0 : index
    %c0_104 = arith.constant 0 : index
    %258 = vector.load %arg4[%c0_103, %c0_104] : memref<32x128xbf16, #tpu.memory_space<vmem>>, vector<32x128xbf16>
    %cst_105 = arith.constant dense<0.000000e+00> : vector<2x128xf32>
    %259 = tpu.matmul %257, %258, %cst_105 {dimension_numbers = #tpu.dot_dimension_numbers<[1], [0], [0], [1], [0, 0, 1, 1], [], []>} : vector<2x32xbf16>, vector<32x128xbf16>, vector<2x128xf32> -> vector<2x128xf32>
    %260 = arith.addf %256, %259 : vector<2x128xf32>
    %261 = arith.index_cast %254 : i32 to index
    %c128_106 = arith.constant 128 : index
    %262 = vector.load %arg10[%261, %c128_106] : memref<16x256xf32, #tpu.memory_space<vmem>>, vector<2x128xf32>
    %263 = arith.truncf %247 : vector<2x32xf32> to vector<2x32xbf16>
    %c0_107 = arith.constant 0 : index
    %c0_108 = arith.constant 0 : index
    %264 = vector.load %arg5[%c0_107, %c0_108] : memref<32x128xbf16, #tpu.memory_space<vmem>>, vector<32x128xbf16>
    %cst_109 = arith.constant dense<0.000000e+00> : vector<2x128xf32>
    %265 = tpu.matmul %263, %264, %cst_109 {dimension_numbers = #tpu.dot_dimension_numbers<[1], [0], [0], [1], [0, 0, 1, 1], [], []>} : vector<2x32xbf16>, vector<32x128xbf16>, vector<2x128xf32> -> vector<2x128xf32>
    %266 = arith.addf %262, %265 : vector<2x128xf32>
    %267 = vector.extract_strided_slice %260 {offsets = [0, 0], sizes = [2, 32], strides = [1, 1]} : vector<2x128xf32> to vector<2x32xf32>
    %cst_110 = arith.constant 5.000000e-01 : f32
    %268 = vector.broadcast %cst_110 : f32 to vector<2x32xf32>
    %269 = arith.mulf %268, %267 : vector<2x32xf32>
    %270 = math.tanh %269 : vector<2x32xf32>
    %cst_111 = arith.constant 1.000000e+00 : f32
    %271 = vector.broadcast %cst_111 : f32 to vector<2x32xf32>
    %272 = arith.addf %270, %271 : vector<2x32xf32>
    %cst_112 = arith.constant 5.000000e-01 : f32
    %273 = vector.broadcast %cst_112 : f32 to vector<2x32xf32>
    %274 = arith.mulf %273, %272 : vector<2x32xf32>
    %275 = vector.extract_strided_slice %260 {offsets = [0, 32], sizes = [2, 32], strides = [1, 1]} : vector<2x128xf32> to vector<2x32xf32>
    %cst_113 = arith.constant 5.000000e-01 : f32
    %276 = vector.broadcast %cst_113 : f32 to vector<2x32xf32>
    %277 = arith.mulf %276, %275 : vector<2x32xf32>
    %278 = math.tanh %277 : vector<2x32xf32>
    %cst_114 = arith.constant 1.000000e+00 : f32
    %279 = vector.broadcast %cst_114 : f32 to vector<2x32xf32>
    %280 = arith.addf %278, %279 : vector<2x32xf32>
    %cst_115 = arith.constant 5.000000e-01 : f32
    %281 = vector.broadcast %cst_115 : f32 to vector<2x32xf32>
    %282 = arith.mulf %281, %280 : vector<2x32xf32>
    %283 = vector.extract_strided_slice %260 {offsets = [0, 64], sizes = [2, 32], strides = [1, 1]} : vector<2x128xf32> to vector<2x32xf32>
    %284 = math.tanh %283 : vector<2x32xf32>
    %285 = vector.extract_strided_slice %260 {offsets = [0, 96], sizes = [2, 32], strides = [1, 1]} : vector<2x128xf32> to vector<2x32xf32>
    %cst_116 = arith.constant 5.000000e-01 : f32
    %286 = vector.broadcast %cst_116 : f32 to vector<2x32xf32>
    %287 = arith.mulf %286, %285 : vector<2x32xf32>
    %288 = math.tanh %287 : vector<2x32xf32>
    %cst_117 = arith.constant 1.000000e+00 : f32
    %289 = vector.broadcast %cst_117 : f32 to vector<2x32xf32>
    %290 = arith.addf %288, %289 : vector<2x32xf32>
    %cst_118 = arith.constant 5.000000e-01 : f32
    %291 = vector.broadcast %cst_118 : f32 to vector<2x32xf32>
    %292 = arith.mulf %291, %290 : vector<2x32xf32>
    %293 = arith.mulf %282, %214 : vector<2x32xf32>
    %294 = arith.mulf %274, %284 : vector<2x32xf32>
    %295 = arith.addf %293, %294 : vector<2x32xf32>
    %296 = math.tanh %295 : vector<2x32xf32>
    %297 = arith.mulf %292, %296 : vector<2x32xf32>
    %298 = vector.extract_strided_slice %266 {offsets = [0, 0], sizes = [2, 32], strides = [1, 1]} : vector<2x128xf32> to vector<2x32xf32>
    %cst_119 = arith.constant 5.000000e-01 : f32
    %299 = vector.broadcast %cst_119 : f32 to vector<2x32xf32>
    %300 = arith.mulf %299, %298 : vector<2x32xf32>
    %301 = math.tanh %300 : vector<2x32xf32>
    %cst_120 = arith.constant 1.000000e+00 : f32
    %302 = vector.broadcast %cst_120 : f32 to vector<2x32xf32>
    %303 = arith.addf %301, %302 : vector<2x32xf32>
    %cst_121 = arith.constant 5.000000e-01 : f32
    %304 = vector.broadcast %cst_121 : f32 to vector<2x32xf32>
    %305 = arith.mulf %304, %303 : vector<2x32xf32>
    %306 = vector.extract_strided_slice %266 {offsets = [0, 32], sizes = [2, 32], strides = [1, 1]} : vector<2x128xf32> to vector<2x32xf32>
    %cst_122 = arith.constant 5.000000e-01 : f32
    %307 = vector.broadcast %cst_122 : f32 to vector<2x32xf32>
    %308 = arith.mulf %307, %306 : vector<2x32xf32>
    %309 = math.tanh %308 : vector<2x32xf32>
    %cst_123 = arith.constant 1.000000e+00 : f32
    %310 = vector.broadcast %cst_123 : f32 to vector<2x32xf32>
    %311 = arith.addf %309, %310 : vector<2x32xf32>
    %cst_124 = arith.constant 5.000000e-01 : f32
    %312 = vector.broadcast %cst_124 : f32 to vector<2x32xf32>
    %313 = arith.mulf %312, %311 : vector<2x32xf32>
    %314 = vector.extract_strided_slice %266 {offsets = [0, 64], sizes = [2, 32], strides = [1, 1]} : vector<2x128xf32> to vector<2x32xf32>
    %315 = math.tanh %314 : vector<2x32xf32>
    %316 = vector.extract_strided_slice %266 {offsets = [0, 96], sizes = [2, 32], strides = [1, 1]} : vector<2x128xf32> to vector<2x32xf32>
    %cst_125 = arith.constant 5.000000e-01 : f32
    %317 = vector.broadcast %cst_125 : f32 to vector<2x32xf32>
    %318 = arith.mulf %317, %316 : vector<2x32xf32>
    %319 = math.tanh %318 : vector<2x32xf32>
    %cst_126 = arith.constant 1.000000e+00 : f32
    %320 = vector.broadcast %cst_126 : f32 to vector<2x32xf32>
    %321 = arith.addf %319, %320 : vector<2x32xf32>
    %cst_127 = arith.constant 5.000000e-01 : f32
    %322 = vector.broadcast %cst_127 : f32 to vector<2x32xf32>
    %323 = arith.mulf %322, %321 : vector<2x32xf32>
    %324 = arith.mulf %313, %245 : vector<2x32xf32>
    %325 = arith.mulf %305, %315 : vector<2x32xf32>
    %326 = arith.addf %324, %325 : vector<2x32xf32>
    %327 = math.tanh %326 : vector<2x32xf32>
    %328 = arith.mulf %323, %327 : vector<2x32xf32>
    %329 = arith.index_cast %253 : i32 to index
    %c0_128 = arith.constant 0 : index
    %330 = vector.load %arg11[%329, %c0_128] : memref<16x32xf32, #tpu.memory_space<vmem>>, vector<2x32xf32>
    tpu.vector_store %arg11[%329, %c0_128], %297 {strides = array<i32>} : memref<16x32xf32, #tpu.memory_space<vmem>>, vector<2x32xf32>,
    %331 = arith.index_cast %254 : i32 to index
    %c0_129 = arith.constant 0 : index
    %332 = vector.load %arg12[%331, %c0_129] : memref<16x32xf32, #tpu.memory_space<vmem>>, vector<2x32xf32>
    tpu.vector_store %arg12[%331, %c0_129], %328 {strides = array<i32>} : memref<16x32xf32, #tpu.memory_space<vmem>>, vector<2x32xf32>,
    %c4_i32 = arith.constant 4 : i32
    %c7_i32_130 = arith.constant 7 : i32
    %333 = arith.subi %c7_i32_130, %c4_i32 : i32
    %c2_i32_131 = arith.constant 2 : i32
    %334 = arith.muli %c4_i32, %c2_i32_131 : i32
    %c2_i32_132 = arith.constant 2 : i32
    %335 = arith.muli %333, %c2_i32_132 : i32
    %336 = arith.index_cast %334 : i32 to index
    %c0_133 = arith.constant 0 : index
    %337 = vector.load %arg10[%336, %c0_133] : memref<16x256xf32, #tpu.memory_space<vmem>>, vector<2x128xf32>
    %338 = arith.truncf %297 : vector<2x32xf32> to vector<2x32xbf16>
    %c0_134 = arith.constant 0 : index
    %c0_135 = arith.constant 0 : index
    %339 = vector.load %arg4[%c0_134, %c0_135] : memref<32x128xbf16, #tpu.memory_space<vmem>>, vector<32x128xbf16>
    %cst_136 = arith.constant dense<0.000000e+00> : vector<2x128xf32>
    %340 = tpu.matmul %338, %339, %cst_136 {dimension_numbers = #tpu.dot_dimension_numbers<[1], [0], [0], [1], [0, 0, 1, 1], [], []>} : vector<2x32xbf16>, vector<32x128xbf16>, vector<2x128xf32> -> vector<2x128xf32>
    %341 = arith.addf %337, %340 : vector<2x128xf32>
    %342 = arith.index_cast %335 : i32 to index
    %c128_137 = arith.constant 128 : index
    %343 = vector.load %arg10[%342, %c128_137] : memref<16x256xf32, #tpu.memory_space<vmem>>, vector<2x128xf32>
    %344 = arith.truncf %328 : vector<2x32xf32> to vector<2x32xbf16>
    %c0_138 = arith.constant 0 : index
    %c0_139 = arith.constant 0 : index
    %345 = vector.load %arg5[%c0_138, %c0_139] : memref<32x128xbf16, #tpu.memory_space<vmem>>, vector<32x128xbf16>
    %cst_140 = arith.constant dense<0.000000e+00> : vector<2x128xf32>
    %346 = tpu.matmul %344, %345, %cst_140 {dimension_numbers = #tpu.dot_dimension_numbers<[1], [0], [0], [1], [0, 0, 1, 1], [], []>} : vector<2x32xbf16>, vector<32x128xbf16>, vector<2x128xf32> -> vector<2x128xf32>
    %347 = arith.addf %343, %346 : vector<2x128xf32>
    %348 = vector.extract_strided_slice %341 {offsets = [0, 0], sizes = [2, 32], strides = [1, 1]} : vector<2x128xf32> to vector<2x32xf32>
    %cst_141 = arith.constant 5.000000e-01 : f32
    %349 = vector.broadcast %cst_141 : f32 to vector<2x32xf32>
    %350 = arith.mulf %349, %348 : vector<2x32xf32>
    %351 = math.tanh %350 : vector<2x32xf32>
    %cst_142 = arith.constant 1.000000e+00 : f32
    %352 = vector.broadcast %cst_142 : f32 to vector<2x32xf32>
    %353 = arith.addf %351, %352 : vector<2x32xf32>
    %cst_143 = arith.constant 5.000000e-01 : f32
    %354 = vector.broadcast %cst_143 : f32 to vector<2x32xf32>
    %355 = arith.mulf %354, %353 : vector<2x32xf32>
    %356 = vector.extract_strided_slice %341 {offsets = [0, 32], sizes = [2, 32], strides = [1, 1]} : vector<2x128xf32> to vector<2x32xf32>
    %cst_144 = arith.constant 5.000000e-01 : f32
    %357 = vector.broadcast %cst_144 : f32 to vector<2x32xf32>
    %358 = arith.mulf %357, %356 : vector<2x32xf32>
    %359 = math.tanh %358 : vector<2x32xf32>
    %cst_145 = arith.constant 1.000000e+00 : f32
    %360 = vector.broadcast %cst_145 : f32 to vector<2x32xf32>
    %361 = arith.addf %359, %360 : vector<2x32xf32>
    %cst_146 = arith.constant 5.000000e-01 : f32
    %362 = vector.broadcast %cst_146 : f32 to vector<2x32xf32>
    %363 = arith.mulf %362, %361 : vector<2x32xf32>
    %364 = vector.extract_strided_slice %341 {offsets = [0, 64], sizes = [2, 32], strides = [1, 1]} : vector<2x128xf32> to vector<2x32xf32>
    %365 = math.tanh %364 : vector<2x32xf32>
    %366 = vector.extract_strided_slice %341 {offsets = [0, 96], sizes = [2, 32], strides = [1, 1]} : vector<2x128xf32> to vector<2x32xf32>
    %cst_147 = arith.constant 5.000000e-01 : f32
    %367 = vector.broadcast %cst_147 : f32 to vector<2x32xf32>
    %368 = arith.mulf %367, %366 : vector<2x32xf32>
    %369 = math.tanh %368 : vector<2x32xf32>
    %cst_148 = arith.constant 1.000000e+00 : f32
    %370 = vector.broadcast %cst_148 : f32 to vector<2x32xf32>
    %371 = arith.addf %369, %370 : vector<2x32xf32>
    %cst_149 = arith.constant 5.000000e-01 : f32
    %372 = vector.broadcast %cst_149 : f32 to vector<2x32xf32>
    %373 = arith.mulf %372, %371 : vector<2x32xf32>
    %374 = arith.mulf %363, %295 : vector<2x32xf32>
    %375 = arith.mulf %355, %365 : vector<2x32xf32>
    %376 = arith.addf %374, %375 : vector<2x32xf32>
    %377 = math.tanh %376 : vector<2x32xf32>
    %378 = arith.mulf %373, %377 : vector<2x32xf32>
    %379 = vector.extract_strided_slice %347 {offsets = [0, 0], sizes = [2, 32], strides = [1, 1]} : vector<2x128xf32> to vector<2x32xf32>
    %cst_150 = arith.constant 5.000000e-01 : f32
    %380 = vector.broadcast %cst_150 : f32 to vector<2x32xf32>
    %381 = arith.mulf %380, %379 : vector<2x32xf32>
    %382 = math.tanh %381 : vector<2x32xf32>
    %cst_151 = arith.constant 1.000000e+00 : f32
    %383 = vector.broadcast %cst_151 : f32 to vector<2x32xf32>
    %384 = arith.addf %382, %383 : vector<2x32xf32>
    %cst_152 = arith.constant 5.000000e-01 : f32
    %385 = vector.broadcast %cst_152 : f32 to vector<2x32xf32>
    %386 = arith.mulf %385, %384 : vector<2x32xf32>
    %387 = vector.extract_strided_slice %347 {offsets = [0, 32], sizes = [2, 32], strides = [1, 1]} : vector<2x128xf32> to vector<2x32xf32>
    %cst_153 = arith.constant 5.000000e-01 : f32
    %388 = vector.broadcast %cst_153 : f32 to vector<2x32xf32>
    %389 = arith.mulf %388, %387 : vector<2x32xf32>
    %390 = math.tanh %389 : vector<2x32xf32>
    %cst_154 = arith.constant 1.000000e+00 : f32
    %391 = vector.broadcast %cst_154 : f32 to vector<2x32xf32>
    %392 = arith.addf %390, %391 : vector<2x32xf32>
    %cst_155 = arith.constant 5.000000e-01 : f32
    %393 = vector.broadcast %cst_155 : f32 to vector<2x32xf32>
    %394 = arith.mulf %393, %392 : vector<2x32xf32>
    %395 = vector.extract_strided_slice %347 {offsets = [0, 64], sizes = [2, 32], strides = [1, 1]} : vector<2x128xf32> to vector<2x32xf32>
    %396 = math.tanh %395 : vector<2x32xf32>
    %397 = vector.extract_strided_slice %347 {offsets = [0, 96], sizes = [2, 32], strides = [1, 1]} : vector<2x128xf32> to vector<2x32xf32>
    %cst_156 = arith.constant 5.000000e-01 : f32
    %398 = vector.broadcast %cst_156 : f32 to vector<2x32xf32>
    %399 = arith.mulf %398, %397 : vector<2x32xf32>
    %400 = math.tanh %399 : vector<2x32xf32>
    %cst_157 = arith.constant 1.000000e+00 : f32
    %401 = vector.broadcast %cst_157 : f32 to vector<2x32xf32>
    %402 = arith.addf %400, %401 : vector<2x32xf32>
    %cst_158 = arith.constant 5.000000e-01 : f32
    %403 = vector.broadcast %cst_158 : f32 to vector<2x32xf32>
    %404 = arith.mulf %403, %402 : vector<2x32xf32>
    %405 = arith.mulf %394, %326 : vector<2x32xf32>
    %406 = arith.mulf %386, %396 : vector<2x32xf32>
    %407 = arith.addf %405, %406 : vector<2x32xf32>
    %408 = math.tanh %407 : vector<2x32xf32>
    %409 = arith.mulf %404, %408 : vector<2x32xf32>
    %410 = arith.index_cast %334 : i32 to index
    %c0_159 = arith.constant 0 : index
    %411 = vector.load %arg11[%410, %c0_159] : memref<16x32xf32, #tpu.memory_space<vmem>>, vector<2x32xf32>
    tpu.vector_store %arg11[%410, %c0_159], %378 {strides = array<i32>} : memref<16x32xf32, #tpu.memory_space<vmem>>, vector<2x32xf32>,
    %412 = arith.index_cast %335 : i32 to index
    %c0_160 = arith.constant 0 : index
    %413 = vector.load %arg12[%412, %c0_160] : memref<16x32xf32, #tpu.memory_space<vmem>>, vector<2x32xf32>
    tpu.vector_store %arg12[%412, %c0_160], %409 {strides = array<i32>} : memref<16x32xf32, #tpu.memory_space<vmem>>, vector<2x32xf32>,
    %c5_i32 = arith.constant 5 : i32
    %c7_i32_161 = arith.constant 7 : i32
    %414 = arith.subi %c7_i32_161, %c5_i32 : i32
    %c2_i32_162 = arith.constant 2 : i32
    %415 = arith.muli %c5_i32, %c2_i32_162 : i32
    %c2_i32_163 = arith.constant 2 : i32
    %416 = arith.muli %414, %c2_i32_163 : i32
    %417 = arith.index_cast %415 : i32 to index
    %c0_164 = arith.constant 0 : index
    %418 = vector.load %arg10[%417, %c0_164] : memref<16x256xf32, #tpu.memory_space<vmem>>, vector<2x128xf32>
    %419 = arith.truncf %378 : vector<2x32xf32> to vector<2x32xbf16>
    %c0_165 = arith.constant 0 : index
    %c0_166 = arith.constant 0 : index
    %420 = vector.load %arg4[%c0_165, %c0_166] : memref<32x128xbf16, #tpu.memory_space<vmem>>, vector<32x128xbf16>
    %cst_167 = arith.constant dense<0.000000e+00> : vector<2x128xf32>
    %421 = tpu.matmul %419, %420, %cst_167 {dimension_numbers = #tpu.dot_dimension_numbers<[1], [0], [0], [1], [0, 0, 1, 1], [], []>} : vector<2x32xbf16>, vector<32x128xbf16>, vector<2x128xf32> -> vector<2x128xf32>
    %422 = arith.addf %418, %421 : vector<2x128xf32>
    %423 = arith.index_cast %416 : i32 to index
    %c128_168 = arith.constant 128 : index
    %424 = vector.load %arg10[%423, %c128_168] : memref<16x256xf32, #tpu.memory_space<vmem>>, vector<2x128xf32>
    %425 = arith.truncf %409 : vector<2x32xf32> to vector<2x32xbf16>
    %c0_169 = arith.constant 0 : index
    %c0_170 = arith.constant 0 : index
    %426 = vector.load %arg5[%c0_169, %c0_170] : memref<32x128xbf16, #tpu.memory_space<vmem>>, vector<32x128xbf16>
    %cst_171 = arith.constant dense<0.000000e+00> : vector<2x128xf32>
    %427 = tpu.matmul %425, %426, %cst_171 {dimension_numbers = #tpu.dot_dimension_numbers<[1], [0], [0], [1], [0, 0, 1, 1], [], []>} : vector<2x32xbf16>, vector<32x128xbf16>, vector<2x128xf32> -> vector<2x128xf32>
    %428 = arith.addf %424, %427 : vector<2x128xf32>
    %429 = vector.extract_strided_slice %422 {offsets = [0, 0], sizes = [2, 32], strides = [1, 1]} : vector<2x128xf32> to vector<2x32xf32>
    %cst_172 = arith.constant 5.000000e-01 : f32
    %430 = vector.broadcast %cst_172 : f32 to vector<2x32xf32>
    %431 = arith.mulf %430, %429 : vector<2x32xf32>
    %432 = math.tanh %431 : vector<2x32xf32>
    %cst_173 = arith.constant 1.000000e+00 : f32
    %433 = vector.broadcast %cst_173 : f32 to vector<2x32xf32>
    %434 = arith.addf %432, %433 : vector<2x32xf32>
    %cst_174 = arith.constant 5.000000e-01 : f32
    %435 = vector.broadcast %cst_174 : f32 to vector<2x32xf32>
    %436 = arith.mulf %435, %434 : vector<2x32xf32>
    %437 = vector.extract_strided_slice %422 {offsets = [0, 32], sizes = [2, 32], strides = [1, 1]} : vector<2x128xf32> to vector<2x32xf32>
    %cst_175 = arith.constant 5.000000e-01 : f32
    %438 = vector.broadcast %cst_175 : f32 to vector<2x32xf32>
    %439 = arith.mulf %438, %437 : vector<2x32xf32>
    %440 = math.tanh %439 : vector<2x32xf32>
    %cst_176 = arith.constant 1.000000e+00 : f32
    %441 = vector.broadcast %cst_176 : f32 to vector<2x32xf32>
    %442 = arith.addf %440, %441 : vector<2x32xf32>
    %cst_177 = arith.constant 5.000000e-01 : f32
    %443 = vector.broadcast %cst_177 : f32 to vector<2x32xf32>
    %444 = arith.mulf %443, %442 : vector<2x32xf32>
    %445 = vector.extract_strided_slice %422 {offsets = [0, 64], sizes = [2, 32], strides = [1, 1]} : vector<2x128xf32> to vector<2x32xf32>
    %446 = math.tanh %445 : vector<2x32xf32>
    %447 = vector.extract_strided_slice %422 {offsets = [0, 96], sizes = [2, 32], strides = [1, 1]} : vector<2x128xf32> to vector<2x32xf32>
    %cst_178 = arith.constant 5.000000e-01 : f32
    %448 = vector.broadcast %cst_178 : f32 to vector<2x32xf32>
    %449 = arith.mulf %448, %447 : vector<2x32xf32>
    %450 = math.tanh %449 : vector<2x32xf32>
    %cst_179 = arith.constant 1.000000e+00 : f32
    %451 = vector.broadcast %cst_179 : f32 to vector<2x32xf32>
    %452 = arith.addf %450, %451 : vector<2x32xf32>
    %cst_180 = arith.constant 5.000000e-01 : f32
    %453 = vector.broadcast %cst_180 : f32 to vector<2x32xf32>
    %454 = arith.mulf %453, %452 : vector<2x32xf32>
    %455 = arith.mulf %444, %376 : vector<2x32xf32>
    %456 = arith.mulf %436, %446 : vector<2x32xf32>
    %457 = arith.addf %455, %456 : vector<2x32xf32>
    %458 = math.tanh %457 : vector<2x32xf32>
    %459 = arith.mulf %454, %458 : vector<2x32xf32>
    %460 = vector.extract_strided_slice %428 {offsets = [0, 0], sizes = [2, 32], strides = [1, 1]} : vector<2x128xf32> to vector<2x32xf32>
    %cst_181 = arith.constant 5.000000e-01 : f32
    %461 = vector.broadcast %cst_181 : f32 to vector<2x32xf32>
    %462 = arith.mulf %461, %460 : vector<2x32xf32>
    %463 = math.tanh %462 : vector<2x32xf32>
    %cst_182 = arith.constant 1.000000e+00 : f32
    %464 = vector.broadcast %cst_182 : f32 to vector<2x32xf32>
    %465 = arith.addf %463, %464 : vector<2x32xf32>
    %cst_183 = arith.constant 5.000000e-01 : f32
    %466 = vector.broadcast %cst_183 : f32 to vector<2x32xf32>
    %467 = arith.mulf %466, %465 : vector<2x32xf32>
    %468 = vector.extract_strided_slice %428 {offsets = [0, 32], sizes = [2, 32], strides = [1, 1]} : vector<2x128xf32> to vector<2x32xf32>
    %cst_184 = arith.constant 5.000000e-01 : f32
    %469 = vector.broadcast %cst_184 : f32 to vector<2x32xf32>
    %470 = arith.mulf %469, %468 : vector<2x32xf32>
    %471 = math.tanh %470 : vector<2x32xf32>
    %cst_185 = arith.constant 1.000000e+00 : f32
    %472 = vector.broadcast %cst_185 : f32 to vector<2x32xf32>
    %473 = arith.addf %471, %472 : vector<2x32xf32>
    %cst_186 = arith.constant 5.000000e-01 : f32
    %474 = vector.broadcast %cst_186 : f32 to vector<2x32xf32>
    %475 = arith.mulf %474, %473 : vector<2x32xf32>
    %476 = vector.extract_strided_slice %428 {offsets = [0, 64], sizes = [2, 32], strides = [1, 1]} : vector<2x128xf32> to vector<2x32xf32>
    %477 = math.tanh %476 : vector<2x32xf32>
    %478 = vector.extract_strided_slice %428 {offsets = [0, 96], sizes = [2, 32], strides = [1, 1]} : vector<2x128xf32> to vector<2x32xf32>
    %cst_187 = arith.constant 5.000000e-01 : f32
    %479 = vector.broadcast %cst_187 : f32 to vector<2x32xf32>
    %480 = arith.mulf %479, %478 : vector<2x32xf32>
    %481 = math.tanh %480 : vector<2x32xf32>
    %cst_188 = arith.constant 1.000000e+00 : f32
    %482 = vector.broadcast %cst_188 : f32 to vector<2x32xf32>
    %483 = arith.addf %481, %482 : vector<2x32xf32>
    %cst_189 = arith.constant 5.000000e-01 : f32
    %484 = vector.broadcast %cst_189 : f32 to vector<2x32xf32>
    %485 = arith.mulf %484, %483 : vector<2x32xf32>
    %486 = arith.mulf %475, %407 : vector<2x32xf32>
    %487 = arith.mulf %467, %477 : vector<2x32xf32>
    %488 = arith.addf %486, %487 : vector<2x32xf32>
    %489 = math.tanh %488 : vector<2x32xf32>
    %490 = arith.mulf %485, %489 : vector<2x32xf32>
    %491 = arith.index_cast %415 : i32 to index
    %c0_190 = arith.constant 0 : index
    %492 = vector.load %arg11[%491, %c0_190] : memref<16x32xf32, #tpu.memory_space<vmem>>, vector<2x32xf32>
    tpu.vector_store %arg11[%491, %c0_190], %459 {strides = array<i32>} : memref<16x32xf32, #tpu.memory_space<vmem>>, vector<2x32xf32>,
    %493 = arith.index_cast %416 : i32 to index
    %c0_191 = arith.constant 0 : index
    %494 = vector.load %arg12[%493, %c0_191] : memref<16x32xf32, #tpu.memory_space<vmem>>, vector<2x32xf32>
    tpu.vector_store %arg12[%493, %c0_191], %490 {strides = array<i32>} : memref<16x32xf32, #tpu.memory_space<vmem>>, vector<2x32xf32>,
    %c6_i32 = arith.constant 6 : i32
    %c7_i32_192 = arith.constant 7 : i32
    %495 = arith.subi %c7_i32_192, %c6_i32 : i32
    %c2_i32_193 = arith.constant 2 : i32
    %496 = arith.muli %c6_i32, %c2_i32_193 : i32
    %c2_i32_194 = arith.constant 2 : i32
    %497 = arith.muli %495, %c2_i32_194 : i32
    %498 = arith.index_cast %496 : i32 to index
    %c0_195 = arith.constant 0 : index
    %499 = vector.load %arg10[%498, %c0_195] : memref<16x256xf32, #tpu.memory_space<vmem>>, vector<2x128xf32>
    %500 = arith.truncf %459 : vector<2x32xf32> to vector<2x32xbf16>
    %c0_196 = arith.constant 0 : index
    %c0_197 = arith.constant 0 : index
    %501 = vector.load %arg4[%c0_196, %c0_197] : memref<32x128xbf16, #tpu.memory_space<vmem>>, vector<32x128xbf16>
    %cst_198 = arith.constant dense<0.000000e+00> : vector<2x128xf32>
    %502 = tpu.matmul %500, %501, %cst_198 {dimension_numbers = #tpu.dot_dimension_numbers<[1], [0], [0], [1], [0, 0, 1, 1], [], []>} : vector<2x32xbf16>, vector<32x128xbf16>, vector<2x128xf32> -> vector<2x128xf32>
    %503 = arith.addf %499, %502 : vector<2x128xf32>
    %504 = arith.index_cast %497 : i32 to index
    %c128_199 = arith.constant 128 : index
    %505 = vector.load %arg10[%504, %c128_199] : memref<16x256xf32, #tpu.memory_space<vmem>>, vector<2x128xf32>
    %506 = arith.truncf %490 : vector<2x32xf32> to vector<2x32xbf16>
    %c0_200 = arith.constant 0 : index
    %c0_201 = arith.constant 0 : index
    %507 = vector.load %arg5[%c0_200, %c0_201] : memref<32x128xbf16, #tpu.memory_space<vmem>>, vector<32x128xbf16>
    %cst_202 = arith.constant dense<0.000000e+00> : vector<2x128xf32>
    %508 = tpu.matmul %506, %507, %cst_202 {dimension_numbers = #tpu.dot_dimension_numbers<[1], [0], [0], [1], [0, 0, 1, 1], [], []>} : vector<2x32xbf16>, vector<32x128xbf16>, vector<2x128xf32> -> vector<2x128xf32>
    %509 = arith.addf %505, %508 : vector<2x128xf32>
    %510 = vector.extract_strided_slice %503 {offsets = [0, 0], sizes = [2, 32], strides = [1, 1]} : vector<2x128xf32> to vector<2x32xf32>
    %cst_203 = arith.constant 5.000000e-01 : f32
    %511 = vector.broadcast %cst_203 : f32 to vector<2x32xf32>
    %512 = arith.mulf %511, %510 : vector<2x32xf32>
    %513 = math.tanh %512 : vector<2x32xf32>
    %cst_204 = arith.constant 1.000000e+00 : f32
    %514 = vector.broadcast %cst_204 : f32 to vector<2x32xf32>
    %515 = arith.addf %513, %514 : vector<2x32xf32>
    %cst_205 = arith.constant 5.000000e-01 : f32
    %516 = vector.broadcast %cst_205 : f32 to vector<2x32xf32>
    %517 = arith.mulf %516, %515 : vector<2x32xf32>
    %518 = vector.extract_strided_slice %503 {offsets = [0, 32], sizes = [2, 32], strides = [1, 1]} : vector<2x128xf32> to vector<2x32xf32>
    %cst_206 = arith.constant 5.000000e-01 : f32
    %519 = vector.broadcast %cst_206 : f32 to vector<2x32xf32>
    %520 = arith.mulf %519, %518 : vector<2x32xf32>
    %521 = math.tanh %520 : vector<2x32xf32>
    %cst_207 = arith.constant 1.000000e+00 : f32
    %522 = vector.broadcast %cst_207 : f32 to vector<2x32xf32>
    %523 = arith.addf %521, %522 : vector<2x32xf32>
    %cst_208 = arith.constant 5.000000e-01 : f32
    %524 = vector.broadcast %cst_208 : f32 to vector<2x32xf32>
    %525 = arith.mulf %524, %523 : vector<2x32xf32>
    %526 = vector.extract_strided_slice %503 {offsets = [0, 64], sizes = [2, 32], strides = [1, 1]} : vector<2x128xf32> to vector<2x32xf32>
    %527 = math.tanh %526 : vector<2x32xf32>
    %528 = vector.extract_strided_slice %503 {offsets = [0, 96], sizes = [2, 32], strides = [1, 1]} : vector<2x128xf32> to vector<2x32xf32>
    %cst_209 = arith.constant 5.000000e-01 : f32
    %529 = vector.broadcast %cst_209 : f32 to vector<2x32xf32>
    %530 = arith.mulf %529, %528 : vector<2x32xf32>
    %531 = math.tanh %530 : vector<2x32xf32>
    %cst_210 = arith.constant 1.000000e+00 : f32
    %532 = vector.broadcast %cst_210 : f32 to vector<2x32xf32>
    %533 = arith.addf %531, %532 : vector<2x32xf32>
    %cst_211 = arith.constant 5.000000e-01 : f32
    %534 = vector.broadcast %cst_211 : f32 to vector<2x32xf32>
    %535 = arith.mulf %534, %533 : vector<2x32xf32>
    %536 = arith.mulf %525, %457 : vector<2x32xf32>
    %537 = arith.mulf %517, %527 : vector<2x32xf32>
    %538 = arith.addf %536, %537 : vector<2x32xf32>
    %539 = math.tanh %538 : vector<2x32xf32>
    %540 = arith.mulf %535, %539 : vector<2x32xf32>
    %541 = vector.extract_strided_slice %509 {offsets = [0, 0], sizes = [2, 32], strides = [1, 1]} : vector<2x128xf32> to vector<2x32xf32>
    %cst_212 = arith.constant 5.000000e-01 : f32
    %542 = vector.broadcast %cst_212 : f32 to vector<2x32xf32>
    %543 = arith.mulf %542, %541 : vector<2x32xf32>
    %544 = math.tanh %543 : vector<2x32xf32>
    %cst_213 = arith.constant 1.000000e+00 : f32
    %545 = vector.broadcast %cst_213 : f32 to vector<2x32xf32>
    %546 = arith.addf %544, %545 : vector<2x32xf32>
    %cst_214 = arith.constant 5.000000e-01 : f32
    %547 = vector.broadcast %cst_214 : f32 to vector<2x32xf32>
    %548 = arith.mulf %547, %546 : vector<2x32xf32>
    %549 = vector.extract_strided_slice %509 {offsets = [0, 32], sizes = [2, 32], strides = [1, 1]} : vector<2x128xf32> to vector<2x32xf32>
    %cst_215 = arith.constant 5.000000e-01 : f32
    %550 = vector.broadcast %cst_215 : f32 to vector<2x32xf32>
    %551 = arith.mulf %550, %549 : vector<2x32xf32>
    %552 = math.tanh %551 : vector<2x32xf32>
    %cst_216 = arith.constant 1.000000e+00 : f32
    %553 = vector.broadcast %cst_216 : f32 to vector<2x32xf32>
    %554 = arith.addf %552, %553 : vector<2x32xf32>
    %cst_217 = arith.constant 5.000000e-01 : f32
    %555 = vector.broadcast %cst_217 : f32 to vector<2x32xf32>
    %556 = arith.mulf %555, %554 : vector<2x32xf32>
    %557 = vector.extract_strided_slice %509 {offsets = [0, 64], sizes = [2, 32], strides = [1, 1]} : vector<2x128xf32> to vector<2x32xf32>
    %558 = math.tanh %557 : vector<2x32xf32>
    %559 = vector.extract_strided_slice %509 {offsets = [0, 96], sizes = [2, 32], strides = [1, 1]} : vector<2x128xf32> to vector<2x32xf32>
    %cst_218 = arith.constant 5.000000e-01 : f32
    %560 = vector.broadcast %cst_218 : f32 to vector<2x32xf32>
    %561 = arith.mulf %560, %559 : vector<2x32xf32>
    %562 = math.tanh %561 : vector<2x32xf32>
    %cst_219 = arith.constant 1.000000e+00 : f32
    %563 = vector.broadcast %cst_219 : f32 to vector<2x32xf32>
    %564 = arith.addf %562, %563 : vector<2x32xf32>
    %cst_220 = arith.constant 5.000000e-01 : f32
    %565 = vector.broadcast %cst_220 : f32 to vector<2x32xf32>
    %566 = arith.mulf %565, %564 : vector<2x32xf32>
    %567 = arith.mulf %556, %488 : vector<2x32xf32>
    %568 = arith.mulf %548, %558 : vector<2x32xf32>
    %569 = arith.addf %567, %568 : vector<2x32xf32>
    %570 = math.tanh %569 : vector<2x32xf32>
    %571 = arith.mulf %566, %570 : vector<2x32xf32>
    %572 = arith.index_cast %496 : i32 to index
    %c0_221 = arith.constant 0 : index
    %573 = vector.load %arg11[%572, %c0_221] : memref<16x32xf32, #tpu.memory_space<vmem>>, vector<2x32xf32>
    tpu.vector_store %arg11[%572, %c0_221], %540 {strides = array<i32>} : memref<16x32xf32, #tpu.memory_space<vmem>>, vector<2x32xf32>,
    %574 = arith.index_cast %497 : i32 to index
    %c0_222 = arith.constant 0 : index
    %575 = vector.load %arg12[%574, %c0_222] : memref<16x32xf32, #tpu.memory_space<vmem>>, vector<2x32xf32>
    tpu.vector_store %arg12[%574, %c0_222], %571 {strides = array<i32>} : memref<16x32xf32, #tpu.memory_space<vmem>>, vector<2x32xf32>,
    %c7_i32_223 = arith.constant 7 : i32
    %c7_i32_224 = arith.constant 7 : i32
    %576 = arith.subi %c7_i32_224, %c7_i32_223 : i32
    %c2_i32_225 = arith.constant 2 : i32
    %577 = arith.muli %c7_i32_223, %c2_i32_225 : i32
    %c2_i32_226 = arith.constant 2 : i32
    %578 = arith.muli %576, %c2_i32_226 : i32
    %579 = arith.index_cast %577 : i32 to index
    %c0_227 = arith.constant 0 : index
    %580 = vector.load %arg10[%579, %c0_227] : memref<16x256xf32, #tpu.memory_space<vmem>>, vector<2x128xf32>
    %581 = arith.truncf %540 : vector<2x32xf32> to vector<2x32xbf16>
    %c0_228 = arith.constant 0 : index
    %c0_229 = arith.constant 0 : index
    %582 = vector.load %arg4[%c0_228, %c0_229] : memref<32x128xbf16, #tpu.memory_space<vmem>>, vector<32x128xbf16>
    %cst_230 = arith.constant dense<0.000000e+00> : vector<2x128xf32>
    %583 = tpu.matmul %581, %582, %cst_230 {dimension_numbers = #tpu.dot_dimension_numbers<[1], [0], [0], [1], [0, 0, 1, 1], [], []>} : vector<2x32xbf16>, vector<32x128xbf16>, vector<2x128xf32> -> vector<2x128xf32>
    %584 = arith.addf %580, %583 : vector<2x128xf32>
    %585 = arith.index_cast %578 : i32 to index
    %c128_231 = arith.constant 128 : index
    %586 = vector.load %arg10[%585, %c128_231] : memref<16x256xf32, #tpu.memory_space<vmem>>, vector<2x128xf32>
    %587 = arith.truncf %571 : vector<2x32xf32> to vector<2x32xbf16>
    %c0_232 = arith.constant 0 : index
    %c0_233 = arith.constant 0 : index
    %588 = vector.load %arg5[%c0_232, %c0_233] : memref<32x128xbf16, #tpu.memory_space<vmem>>, vector<32x128xbf16>
    %cst_234 = arith.constant dense<0.000000e+00> : vector<2x128xf32>
    %589 = tpu.matmul %587, %588, %cst_234 {dimension_numbers = #tpu.dot_dimension_numbers<[1], [0], [0], [1], [0, 0, 1, 1], [], []>} : vector<2x32xbf16>, vector<32x128xbf16>, vector<2x128xf32> -> vector<2x128xf32>
    %590 = arith.addf %586, %589 : vector<2x128xf32>
    %591 = vector.extract_strided_slice %584 {offsets = [0, 0], sizes = [2, 32], strides = [1, 1]} : vector<2x128xf32> to vector<2x32xf32>
    %cst_235 = arith.constant 5.000000e-01 : f32
    %592 = vector.broadcast %cst_235 : f32 to vector<2x32xf32>
    %593 = arith.mulf %592, %591 : vector<2x32xf32>
    %594 = math.tanh %593 : vector<2x32xf32>
    %cst_236 = arith.constant 1.000000e+00 : f32
    %595 = vector.broadcast %cst_236 : f32 to vector<2x32xf32>
    %596 = arith.addf %594, %595 : vector<2x32xf32>
    %cst_237 = arith.constant 5.000000e-01 : f32
    %597 = vector.broadcast %cst_237 : f32 to vector<2x32xf32>
    %598 = arith.mulf %597, %596 : vector<2x32xf32>
    %599 = vector.extract_strided_slice %584 {offsets = [0, 32], sizes = [2, 32], strides = [1, 1]} : vector<2x128xf32> to vector<2x32xf32>
    %cst_238 = arith.constant 5.000000e-01 : f32
    %600 = vector.broadcast %cst_238 : f32 to vector<2x32xf32>
    %601 = arith.mulf %600, %599 : vector<2x32xf32>
    %602 = math.tanh %601 : vector<2x32xf32>
    %cst_239 = arith.constant 1.000000e+00 : f32
    %603 = vector.broadcast %cst_239 : f32 to vector<2x32xf32>
    %604 = arith.addf %602, %603 : vector<2x32xf32>
    %cst_240 = arith.constant 5.000000e-01 : f32
    %605 = vector.broadcast %cst_240 : f32 to vector<2x32xf32>
    %606 = arith.mulf %605, %604 : vector<2x32xf32>
    %607 = vector.extract_strided_slice %584 {offsets = [0, 64], sizes = [2, 32], strides = [1, 1]} : vector<2x128xf32> to vector<2x32xf32>
    %608 = math.tanh %607 : vector<2x32xf32>
    %609 = vector.extract_strided_slice %584 {offsets = [0, 96], sizes = [2, 32], strides = [1, 1]} : vector<2x128xf32> to vector<2x32xf32>
    %cst_241 = arith.constant 5.000000e-01 : f32
    %610 = vector.broadcast %cst_241 : f32 to vector<2x32xf32>
    %611 = arith.mulf %610, %609 : vector<2x32xf32>
    %612 = math.tanh %611 : vector<2x32xf32>
    %cst_242 = arith.constant 1.000000e+00 : f32
    %613 = vector.broadcast %cst_242 : f32 to vector<2x32xf32>
    %614 = arith.addf %612, %613 : vector<2x32xf32>
    %cst_243 = arith.constant 5.000000e-01 : f32
    %615 = vector.broadcast %cst_243 : f32 to vector<2x32xf32>
    %616 = arith.mulf %615, %614 : vector<2x32xf32>
    %617 = arith.mulf %606, %538 : vector<2x32xf32>
    %618 = arith.mulf %598, %608 : vector<2x32xf32>
    %619 = arith.addf %617, %618 : vector<2x32xf32>
    %620 = math.tanh %619 : vector<2x32xf32>
    %621 = arith.mulf %616, %620 : vector<2x32xf32>
    %622 = vector.extract_strided_slice %590 {offsets = [0, 0], sizes = [2, 32], strides = [1, 1]} : vector<2x128xf32> to vector<2x32xf32>
    %cst_244 = arith.constant 5.000000e-01 : f32
    %623 = vector.broadcast %cst_244 : f32 to vector<2x32xf32>
    %624 = arith.mulf %623, %622 : vector<2x32xf32>
    %625 = math.tanh %624 : vector<2x32xf32>
    %cst_245 = arith.constant 1.000000e+00 : f32
    %626 = vector.broadcast %cst_245 : f32 to vector<2x32xf32>
    %627 = arith.addf %625, %626 : vector<2x32xf32>
    %cst_246 = arith.constant 5.000000e-01 : f32
    %628 = vector.broadcast %cst_246 : f32 to vector<2x32xf32>
    %629 = arith.mulf %628, %627 : vector<2x32xf32>
    %630 = vector.extract_strided_slice %590 {offsets = [0, 32], sizes = [2, 32], strides = [1, 1]} : vector<2x128xf32> to vector<2x32xf32>
    %cst_247 = arith.constant 5.000000e-01 : f32
    %631 = vector.broadcast %cst_247 : f32 to vector<2x32xf32>
    %632 = arith.mulf %631, %630 : vector<2x32xf32>
    %633 = math.tanh %632 : vector<2x32xf32>
    %cst_248 = arith.constant 1.000000e+00 : f32
    %634 = vector.broadcast %cst_248 : f32 to vector<2x32xf32>
    %635 = arith.addf %633, %634 : vector<2x32xf32>
    %cst_249 = arith.constant 5.000000e-01 : f32
    %636 = vector.broadcast %cst_249 : f32 to vector<2x32xf32>
    %637 = arith.mulf %636, %635 : vector<2x32xf32>
    %638 = vector.extract_strided_slice %590 {offsets = [0, 64], sizes = [2, 32], strides = [1, 1]} : vector<2x128xf32> to vector<2x32xf32>
    %639 = math.tanh %638 : vector<2x32xf32>
    %640 = vector.extract_strided_slice %590 {offsets = [0, 96], sizes = [2, 32], strides = [1, 1]} : vector<2x128xf32> to vector<2x32xf32>
    %cst_250 = arith.constant 5.000000e-01 : f32
    %641 = vector.broadcast %cst_250 : f32 to vector<2x32xf32>
    %642 = arith.mulf %641, %640 : vector<2x32xf32>
    %643 = math.tanh %642 : vector<2x32xf32>
    %cst_251 = arith.constant 1.000000e+00 : f32
    %644 = vector.broadcast %cst_251 : f32 to vector<2x32xf32>
    %645 = arith.addf %643, %644 : vector<2x32xf32>
    %cst_252 = arith.constant 5.000000e-01 : f32
    %646 = vector.broadcast %cst_252 : f32 to vector<2x32xf32>
    %647 = arith.mulf %646, %645 : vector<2x32xf32>
    %648 = arith.mulf %637, %569 : vector<2x32xf32>
    %649 = arith.mulf %629, %639 : vector<2x32xf32>
    %650 = arith.addf %648, %649 : vector<2x32xf32>
    %651 = math.tanh %650 : vector<2x32xf32>
    %652 = arith.mulf %647, %651 : vector<2x32xf32>
    %653 = arith.index_cast %577 : i32 to index
    %c0_253 = arith.constant 0 : index
    %654 = vector.load %arg11[%653, %c0_253] : memref<16x32xf32, #tpu.memory_space<vmem>>, vector<2x32xf32>
    tpu.vector_store %arg11[%653, %c0_253], %621 {strides = array<i32>} : memref<16x32xf32, #tpu.memory_space<vmem>>, vector<2x32xf32>,
    %655 = arith.index_cast %578 : i32 to index
    %c0_254 = arith.constant 0 : index
    %656 = vector.load %arg12[%655, %c0_254] : memref<16x32xf32, #tpu.memory_space<vmem>>, vector<2x32xf32>
    tpu.vector_store %arg12[%655, %c0_254], %652 {strides = array<i32>} : memref<16x32xf32, #tpu.memory_space<vmem>>, vector<2x32xf32>,
    %c8_i32 = arith.constant 8 : i32
    %c0_255 = arith.constant 0 : index
    %c0_256 = arith.constant 0 : index
    %657 = vector.load %arg11[%c0_255, %c0_256] : memref<16x32xf32, #tpu.memory_space<vmem>>, vector<16x32xf32>
    %658 = arith.truncf %657 : vector<16x32xf32> to vector<16x32xbf16>
    %c0_257 = arith.constant 0 : index
    %c0_258 = arith.constant 0 : index
    %659 = vector.load %arg12[%c0_257, %c0_258] : memref<16x32xf32, #tpu.memory_space<vmem>>, vector<16x32xf32>
    %660 = arith.truncf %659 : vector<16x32xf32> to vector<16x32xbf16>
    %c0_259 = arith.constant 0 : index
    %c0_260 = arith.constant 0 : index
    %661 = vector.load %arg6[%c0_259, %c0_260] : memref<32x16xbf16, #tpu.memory_space<vmem>>, vector<32x16xbf16>
    %cst_261 = arith.constant dense<0.000000e+00> : vector<16x16xf32>
    %662 = tpu.matmul %658, %661, %cst_261 {dimension_numbers = #tpu.dot_dimension_numbers<[1], [0], [0], [1], [0, 0, 1, 1], [], []>} : vector<16x32xbf16>, vector<32x16xbf16>, vector<16x16xf32> -> vector<16x16xf32>
    %c0_262 = arith.constant 0 : index
    %c0_263 = arith.constant 0 : index
    %663 = vector.load %arg7[%c0_262, %c0_263] : memref<32x16xbf16, #tpu.memory_space<vmem>>, vector<32x16xbf16>
    %cst_264 = arith.constant dense<0.000000e+00> : vector<16x16xf32>
    %664 = tpu.matmul %660, %663, %cst_264 {dimension_numbers = #tpu.dot_dimension_numbers<[1], [0], [0], [1], [0, 0, 1, 1], [], []>} : vector<16x32xbf16>, vector<32x16xbf16>, vector<16x16xf32> -> vector<16x16xf32>
    %665 = arith.addf %662, %664 : vector<16x16xf32>
    %c0_265 = arith.constant 0 : index
    %c0_266 = arith.constant 0 : index
    %666 = vector.load %arg8[%c0_265, %c0_266] : memref<1x16xf32, #tpu.memory_space<vmem>>, vector<1x16xf32>
    %667 = vector.broadcast %666 : vector<1x16xf32> to vector<16x16xf32>
    %668 = arith.addf %665, %667 : vector<16x16xf32>
    %c0_267 = arith.constant 0 : index
    %c0_268 = arith.constant 0 : index
    %669 = vector.load %arg9[%c0_267, %c0_268] : memref<16x16xf32, #tpu.memory_space<vmem>>, vector<16x16xf32>
    tpu.vector_store %arg9[%c0_267, %c0_268], %668 {strides = array<i32>} : memref<16x16xf32, #tpu.memory_space<vmem>>, vector<16x16xf32>,
    return
  }
  func.func @transform_0(%arg0: i32) -> (i32, i32) {
    %c0_i32 = arith.constant 0 : i32
    %c0_i32_0 = arith.constant 0 : i32
    %c0_i32_1 = arith.constant 0 : i32
    return %c0_i32, %c0_i32_0 : i32, i32
  }
  func.func @transform_1(%arg0: i32) -> (i32, i32) {
    %c0_i32 = arith.constant 0 : i32
    %c0_i32_0 = arith.constant 0 : i32
    %c0_i32_1 = arith.constant 0 : i32
    return %c0_i32, %c0_i32_0 : i32, i32
  }
  func.func @transform_2(%arg0: i32) -> (i32, i32) {
    %c0_i32 = arith.constant 0 : i32
    %c0_i32_0 = arith.constant 0 : i32
    %c0_i32_1 = arith.constant 0 : i32
    return %c0_i32, %c0_i32_0 : i32, i32
  }
  func.func @transform_3(%arg0: i32) -> (i32, i32) {
    %c0_i32 = arith.constant 0 : i32
    %c0_i32_0 = arith.constant 0 : i32
    %c0_i32_1 = arith.constant 0 : i32
    return %c0_i32, %c0_i32_0 : i32, i32
  }
  func.func @transform_4(%arg0: i32) -> (i32, i32) {
    %c0_i32 = arith.constant 0 : i32
    %c0_i32_0 = arith.constant 0 : i32
    %c0_i32_1 = arith.constant 0 : i32
    return %c0_i32, %c0_i32_0 : i32, i32
  }
  func.func @transform_5(%arg0: i32) -> (i32, i32) {
    %c0_i32 = arith.constant 0 : i32
    %c0_i32_0 = arith.constant 0 : i32
    %c0_i32_1 = arith.constant 0 : i32
    return %c0_i32, %c0_i32_0 : i32, i32
  }
  func.func @transform_6(%arg0: i32) -> (i32, i32) {
    %c0_i32 = arith.constant 0 : i32
    %c0_i32_0 = arith.constant 0 : i32
    %c0_i32_1 = arith.constant 0 : i32
    return %c0_i32, %c0_i32_0 : i32, i32
  }
  func.func @transform_7(%arg0: i32) -> (i32, i32) {
    %c0_i32 = arith.constant 0 : i32
    %c0_i32_0 = arith.constant 0 : i32
    %c0_i32_1 = arith.constant 0 : i32
    return %c0_i32, %c0_i32_0 : i32, i32
  }
  func.func @transform_8(%arg0: i32) -> (i32, i32) {
    %c0_i32 = arith.constant 0 : i32
    %c0_i32_0 = arith.constant 0 : i32
    %c0_i32_1 = arith.constant 0 : i32
    return %c0_i32, %c0_i32_0 : i32, i32
  }
}

</mosaic_0001>

<bundles_post_ra>
// kernel: tpu_custom_call.1
= control target key start
LH: loop header
LB: loop body
LE: loop exit
PB: predicated region body
PF: predicated region fallthrough
CT: control target
= control target key end

     0   :  { %13 = vsyncpa [#allocation6], 0  ;;  %s2749_s0 = inlined_call_operand.vmem [shape: f32[16,16], index: 0, kind: input, shape index: {}]   ;;  %s2750_s1 = inlined_call_operand.vmem [shape: bf16[16,256], index: 1, kind: input, shape index: {}]   ;;  %s2751_s2 = inlined_call_operand.vmem [shape: f32[1,256], index: 2, kind: input, shape index: {}]   ;;  %s2752_s3 = inlined_call_operand.vmem [shape: bf16[32,128], index: 3, kind: input, shape index: {}]   ;;  %s2753_s4 = inlined_call_operand.hbm [shape: bf16[32,128], index: 4, kind: input, shape index: {}]   ;;  %s2754_s5 = inlined_call_operand.vmem [shape: bf16[32,16], index: 5, kind: input, shape index: {}]   ;;  %s2755_s6 = inlined_call_operand.vmem [shape: bf16[32,16], index: 6, kind: input, shape index: {}]   ;;  %s2756_s7 = inlined_call_operand.vmem [shape: f32[1,16], index: 7, kind: input, shape index: {}]   ;;  %s2757_s8 = inlined_call_operand.hbm [shape: f32[16,16], index: 8, kind: output, shape index: {}]  }
   0x1   :  { %14 = vsyncpa [#allocation7], 0  ;;  %s2279_s27 = smov [#allocation5]   ;;  %s2231_s9 = scalar_lea.hbm %s2753_s4, 256 }
   0x2   :  { %s28_s28 = sshll.u32 %s2279_s27, 4  ;;  %p2232_p0 = scmp.ne.s32.totalorder %s2753_s4, %s2231_s9  ;;  %s29_s28 = int_to_ptr.vmem [resolvable:$true] %s28_s28 }
   0x3   :  { %p2235_p1 = scmp.lt.u32.totalorder %s2231_s9, %s2753_s4 }
   0x5   :  { %p2237_p2 = pnand %p2235_p1, %p2232_p0 }
   0x7   :  { %2240 = shalt.err (!%p2237_p2)
}
   0x8   :  { %s2241_s14 = scalar_lea.vmem %s29_s28, 256  ;;  %p2246_p4 = scmp.lt.s32.totalorder %s29_s28, %s29_s28 }
   0x9   :  { %p2242_p3 = scmp.ne.s32.totalorder %s29_s28, %s2241_s14  ;;  %p2247_p5 = scmp.lt.s32.totalorder %s2241_s14, %s2241_s14 }
   0xb   :  { %p2248_p6 = por %p2247_p5, %p2246_p4 }
   0xd   :  { %p2249_p7 = pnand %p2248_p6, %p2242_p3 }
   0xf   :  { %2252 = shalt.err (!%p2249_p7)
}
  0x10   :  { %s2280_s15 = smov 64   ;;  %s2281_s16 = smov 4  }
  0x11   :  { %34 = dma.hbm_to_vmem [thread:$0]  %s2753_s4, 256, %s29_s28, [#allocation6], %s2280_s15, %s2280_s15, %s2281_s16  }
  0x12   :  { %2275 = dma.done.wait [#allocation6], 256  }
  0x13   :  { %2276 = vsyncadd [#allocation6], 4294967040  ;;  %v2282_v0 = vmov 0   ;;  %v2283_v1 = vmov 0.0   ;;  %vm2284_vm0 = vmmov 0   ;;  %v45_v4 = vld [vmem:[%s2749_s0] sm:$0xff]  ;;  %v52_v11 = vlaneseq }
  0x14   :  { %108 = vmatprep.mubr.bf16.mxu0 %v2282_v0  ;;  %1942 = vmatprep.subr.bf16.mxu1 %v2283_v1  ;;  %v2096_v2 = vld [vmem:[%s2750_s1 + $0x4] ss:$8 sps:$4 sm:$0xff]   ;;  %v2098_v3 = vld [vmem:[%s2750_s1] ss:$8 sps:$4 sm:$0xff]   ;;  %vm72_vm1 = vcmask 130048   ;;  %vm140_vm2 = vcmask 261120  }
  0x15   :  { %1946 = vmatprep.mubr.msk.bf16.mxu1 %vm2284_vm0, %v2283_v1  ;;  %v46_v5 = vld [vmem:[%s2749_s0 + $0x8] sm:$0xff]  ;;  %76 = vmatprep.subr.bf16.mxu0 %v2096_v2  ;;  %v2099_v7 = vld [vmem:[%s2752_s3] sm:$0xff]   ;;  %v53_v12 = vshrl.u32 %v52_v11, 7  ;;  %vm294_vm3 = vcmask 254976   ;;  %vm300_vm4 = vcmask 261126   ;;  %vm493_vm5 = vcmask 257026  }
  0x16   :  { %v47_v6 = vpack.c.bf16 %v46_v5, %v45_v4  ;;  %77 = vmatpush1.bf16.msra.mxu0 %v2098_v3  ;;  %v2100_v8 = vld [vmem:[#allocation5] sm:$0xff]   ;;  %1943 = vmatpush3.bf16.msra.mxu1 %v2099_v7  ;;  %v2101_v9 = vld [vmem:[%s2752_s3 + $0x8] sm:$0xff]   ;;  %vm499_vm6 = vcmask 259076  }
  0x17   :  { %1950 = vmatprep.subr.bf16.mxu0 %v2283_v1  ;;  %1944 = vmatprep.subr.bf16.mxu1 %v2283_v1  ;;  %v2102_v10 = vld [vmem:[#allocation5 + $0x8] sm:$0xff]   ;;  %v54_v13 = vsub.s32 0, %v53_v12  ;;  %v50_v14 = vld [vmem:[%s2751_s2] sm:$0x3]  ;;  %v58_v15 = vsub.s32 1, %v53_v12  ;;  %s2285_s2 = smov 32  }
  0x18   :  { %v2103_v59 = vld [vmem:[%s2752_s3] sm:$0xff]   ;;  %v2104_v62 = vld [vmem:[%s2752_s3 + $0x8] sm:$0xff]  }
  0x19   :  { %1834 = vmatmul.mubr.msk.bf16.vlgmr.msra.gmra.mrb[0].mxu0 %vm72_vm1, %v47_v6  ;;  %v55_v16 = vrot.slane %v50_v14, %v54_v13  ;;  %v59_v17 = vrot.slane %v50_v14, %v58_v15  ;;  %v2105_v60 = vld [vmem:[#allocation5] sm:$0xff]  }
  0x1a   :  { %1951 = vmatpush3.bf16.msra.mxu0 %v2100_v8  ;;  %1954 = vmatprep.mubr.msk.bf16.mxu0 %vm2284_vm0, %v2283_v1 }
  0x1b   :  { %1945 = vmatpush3.bf16.msra.mxu1 %v2101_v9  ;;  %1952 = vmatprep.subr.bf16.mxu0 %v2283_v1 }
  0x1c   :  { %1958 = vmatprep.subr.bf16.mxu1 %v2283_v1 }
  0x1e   :  { %1953 = vmatpush3.bf16.msra.mxu0 %v2102_v10  ;;  %1947 = vmatmul.mubr.bf16.vlgmr.msra.gmra.mrb[0].mxu1 %v2282_v0 }
  0x1f   :  { %1966 = vmatprep.subr.bf16.mxu0 %v2283_v1  ;;  %1962 = vmatprep.mubr.msk.bf16.mxu1 %vm2284_vm0, %v2283_v1 }
  0x20   :  { %1959 = vmatpush3.bf16.msra.mxu1 %v2103_v59 }
  0x21   :  { %1955 = vmatmul.mubr.bf16.vlgmr.msra.gmra.mrb[4].mxu0 %v2282_v0  ;;  %1960 = vmatprep.subr.bf16.mxu1 %v2283_v1  ;;  %v2106_v0 = vld [vmem:[#allocation5 + $0x8] sm:$0xff]  }
  0x22   :  { %1970 = vmatprep.mubr.msk.bf16.mxu0 %vm2284_vm0, %v2283_v1  ;;  %1967 = vmatpush3.bf16.msra.mxu0 %v2105_v60 }
  0x23   :  { %1968 = vmatprep.subr.bf16.mxu0 %v2283_v1 }
  0x24   :  { %1961 = vmatpush3.bf16.msra.mxu1 %v2104_v62 }
  0x25   :  { %1974 = vmatprep.subr.bf16.mxu1 %v2283_v1 }
  0x26   :  { %1969 = vmatpush3.bf16.msra.mxu0 %v2106_v0 }
  0x27   :  { %1982 = vmatprep.subr.bf16.mxu0 %v2283_v1 }
  0xec   :  { %v110_v18 = vpop.f32.mrb[0].mxu0 }
  0xed   :  { %v111_v19 = vadd.f32 %v110_v18, %v55_v16  ;;  %v112_v20 = vpop.f32.mrb[1].mxu0 }
  0xee   :  { %v113_v21 = vadd.f32 %v112_v20, %v59_v17  ;;  %v114_v22 = vpop.f32.mrb[2].mxu0 }
  0xef   :  { %119 = vst [vmem:[#allocation2] sm:$0xff] %v111_v19  ;;  %v115_v23 = vadd.f32 %v114_v22, %v55_v16  ;;  %v116_v24 = vpop.f32.mrb[3].mxu0 }
  0xf0   :  { %120 = vst [vmem:[#allocation2 + $0x8] sm:$0xff] %v113_v21  ;;  %v117_v25 = vadd.f32 %v116_v24, %v59_v17 }
  0xf1   :  { %121 = vst [vmem:[#allocation2 + $0x10] sm:$0xff] %v115_v23  ;;  %v178_v26 = vpop.f32.mrb[0].mxu1 }
  0xf2   :  { %122 = vst [vmem:[#allocation2 + $0x18] sm:$0xff] %v117_v25  ;;  %v1948_v27 = vpop.f32.mrb[1].mxu1 }
  0xf3   :  { %v181_v28 = vpop.f32.mrb[2].mxu1 }
  0xf4   :  { %v236_v29 = vpop.f32.mrb[4].mxu0  ;;  %v1949_v30 = vpop.f32.mrb[3].mxu1 }
  0xf5   :  { %v1956_v31 = vpop.f32.mrb[5].mxu0  ;;  %v243_v33 = vrot.slane %v236_v29, 2 }
  0xf6   :  { %v123_v32 = vld [vmem:[#allocation2] sm:$0x3]  ;;  %v239_v34 = vpop.f32.mrb[6].mxu0  ;;  %v302_v14 = vld [vmem:[#allocation2] sm:$0xc] }
  0xf7   :  { %v184_v35 = vadd.f32 %v178_v26, %v123_v32  ;;  %v1957_v36 = vpop.f32.mrb[7].mxu0 }
  0xf9   :  { %v185_v37 = vld [vmem:[#allocation2 + $0x18] sm:$0xc0]  ;;  %2135 = vtanh.f32 %v184_v35  ;;  %v246_v41 = vmul.f32 0.5, %v184_v35  ;;  %v370_v21 = vld [vmem:[#allocation2 + $0x18] sm:$0x30] }
  0xfa   :  { %v245_v38 = vadd.f32 %v243_v33, %v185_v37 }
  0xfc   :  { %2137 = vtanh.f32 %v245_v38  ;;  %v268_v42 = vmul.f32 0.5, %v245_v38 }
  0xfd   :  { %2139 = vtanh.f32 %v246_v41 }
  0xfe   :  { %2141 = vtanh.f32 %v268_v42 }
 0x103   :  { %v2136_v39 = vpop.eup %2135 }
 0x104   :  { %253 = vrot.lane.b32.xlu0 %v2136_v39, %s2280_s15 }
 0x106   :  { %v2138_v40 = vpop.eup %2137 }
 0x107   :  { %v2140_v43 = vpop.eup %2139 }
 0x108   :  { %275 = vrot.lane.b32.xlu0 %v2138_v40, %s2280_s15  ;;  %v248_v44 = vadd.f32 1.0, %v2140_v43  ;;  %v2142_v45 = vpop.eup %2141 }
 0x109   :  { %v270_v47 = vadd.f32 1.0, %v2142_v45 }
 0x10a   :  { %v249_v46 = vmul.f32 0.5, %v248_v44 }
 0x10b   :  { %v271_v50 = vmul.f32 0.5, %v270_v47 }
 0x10c   :  { %v251_v53 = vmul.f32 0.0, %v249_v46 }
 0x10d   :  { %v273_v56 = vmul.f32 0.0, %v271_v50 }
 0x176   :  { %v254_v48 = vpop.permute.xlu0 %253 }
 0x177   :  { %v256_v49 = vmul.f32 %v254_v48, %v249_v46  ;;  %v2107_v48 = vld [vmem:[%s2752_s3] sm:$0xff]  }
 0x179   :  { %258 = vrot.lane.b32.xlu1 %v256_v49, %s2285_s2  ;;  %v2109_v49 = vld [vmem:[#allocation5] sm:$0xff]  }
 0x17a   :  { %v276_v51 = vpop.permute.xlu0 %275 }
 0x17b   :  { %v278_v52 = vmul.f32 %v276_v51, %v271_v50 }
 0x17d   :  { %280 = vrot.lane.b32.xlu1 %v278_v52, %s2285_s2  ;;  %v2110_v52 = vld [vmem:[#allocation5 + $0x8] sm:$0xff]  }
 0x1eb   :  { %v259_v54 = vpop.permute.xlu1 %258 }
 0x1ec   :  { %v2388_v55 = vadd.f32 %v259_v54, %v251_v53 }
 0x1ee   :  { %2143 = vtanh.f32 %v2388_v55  ;;  %v445_v39 = vrot.slane %v2388_v55, 6 }
 0x1ef   :  { %v281_v57 = vpop.permute.xlu1 %280 }
 0x1f0   :  { %v2391_v58 = vadd.f32 %v281_v57, %v273_v56 }
 0x1f2   :  { %2145 = vtanh.f32 %v2391_v58  ;;  %v470_v43 = vrot.slane %v2391_v58, 2 }
 0x1f8   :  { %v2144_v61 = vpop.eup %2143 }
 0x1f9   :  { %264 = vrot.lane.b32.xlu0 %v2144_v61, %s2280_s15 }
 0x1fc   :  { %v2146_v63 = vpop.eup %2145 }
 0x1fd   :  { %286 = vrot.lane.b32.xlu1 %v2146_v63, %s2280_s15 }
 0x26b   :  { %v265_v2 = vpop.permute.xlu0 %264 }
 0x26c   :  { %v2406_v3 = vmul.f32 %v265_v2, %v249_v46 }
 0x26e   :  { %v303_v4 = vpack.c.bf16 %v2406_v3, %v2406_v3 }
 0x26f   :  { %v287_v5 = vpop.permute.xlu1 %286 }
 0x270   :  { %v2410_v6 = vmul.f32 %v287_v5, %v271_v50  ;;  %309 = vrot.lane.b32.xlu0 %v303_v4, %s2285_s2  ;;  %v2108_v50 = vld [vmem:[%s2752_s3 + $0x8] sm:$0xff]   ;;  %v501_v4 = vld [vmem:[#allocation2] sm:$0x30] }
 0x272   :  { %v371_v7 = vpack.c.bf16 %v2410_v6, %v2410_v6 }
 0x274   :  { %v377_v8 = vrot.slane %v371_v7, 3 }
 0x276   :  { %378 = vrot.lane.b32.xlu1 %v377_v8, %s2285_s2 }
 0x2e2   :  { %v310_v9 = vpop.permute.xlu0 %309 }
 0x2e3   :  { %1963 = vmatmul.mubr.msk.bf16.vlgmr.msra.gmra.mrb[4].mxu1 %vm140_vm2, %v310_v9 }
 0x2e4   :  { %1978 = vmatprep.mubr.msk.bf16.mxu1 %vm2284_vm0, %v2283_v1  ;;  %1975 = vmatpush3.bf16.msra.mxu1 %v2107_v48 }
 0x2e5   :  { %1976 = vmatprep.subr.bf16.mxu1 %v2283_v1 }
 0x2e8   :  { %v379_v10 = vpop.permute.xlu1 %378  ;;  %1977 = vmatpush3.bf16.msra.mxu1 %v2108_v50 }
 0x2e9   :  { %1971 = vmatmul.mubr.msk.bf16.vlgmr.msra.gmra.mrb[8].mxu0 %vm140_vm2, %v379_v10  ;;  %1990 = vmatprep.subr.bf16.mxu1 %v2283_v1 }
 0x2ea   :  { %1986 = vmatprep.mubr.msk.bf16.mxu0 %vm2284_vm0, %v2283_v1  ;;  %1983 = vmatpush3.bf16.msra.mxu0 %v2109_v49 }
 0x2eb   :  { %1984 = vmatprep.subr.bf16.mxu0 %v2283_v1 }
 0x2ee   :  { %1985 = vmatpush3.bf16.msra.mxu0 %v2110_v52 }
 0x2ef   :  { %1998 = vmatprep.subr.bf16.mxu0 %v2283_v1 }
 0x3b6   :  { %v360_v11 = vpop.f32.mrb[4].mxu1 }
 0x3b7   :  { %v367_v12 = vrot.slane %v360_v11, 6  ;;  %v1964_v13 = vpop.f32.mrb[5].mxu1 }
 0x3b8   :  { %v363_v15 = vpop.f32.mrb[6].mxu1 }
 0x3b9   :  { %v369_v16 = vadd.f32 %v367_v12, %v302_v14  ;;  %v1965_v17 = vpop.f32.mrb[7].mxu1  ;;  %v570_v12 = vld [vmem:[#allocation2 + $0x18] sm:$0xc] }
 0x3bb   :  { %2147 = vtanh.f32 %v369_v16  ;;  %v439_v27 = vmul.f32 0.5, %v369_v16 }
 0x3bc   :  { %v429_v18 = vpop.f32.mrb[8].mxu0 }
 0x3bd   :  { %v436_v19 = vrot.slane %v429_v18, 4  ;;  %v1972_v20 = vpop.f32.mrb[9].mxu0 }
 0x3be   :  { %v432_v22 = vpop.f32.mrb[10].mxu0 }
 0x3bf   :  { %v438_v23 = vadd.f32 %v436_v19, %v370_v21  ;;  %v1973_v24 = vpop.f32.mrb[11].mxu0 }
 0x3c1   :  { %2149 = vtanh.f32 %v438_v23  ;;  %v464_v28 = vmul.f32 0.5, %v438_v23 }
 0x3c2   :  { %2151 = vtanh.f32 %v439_v27 }
 0x3c3   :  { %2153 = vtanh.f32 %v464_v28 }
 0x3c5   :  { %v2148_v25 = vpop.eup %2147 }
 0x3c6   :  { %449 = vrot.lane.b32.xlu0 %v2148_v25, %s2280_s15 }
 0x3cb   :  { %v2150_v26 = vpop.eup %2149 }
 0x3cc   :  { %474 = vrot.lane.b32.xlu1 %v2150_v26, %s2280_s15  ;;  %v2152_v29 = vpop.eup %2151 }
 0x3cd   :  { %v441_v30 = vadd.f32 1.0, %v2152_v29  ;;  %v2154_v31 = vpop.eup %2153 }
 0x3ce   :  { %v466_v35 = vadd.f32 1.0, %v2154_v31 }
 0x3cf   :  { %v442_v32 = vmul.f32 0.5, %v441_v30 }
 0x3d0   :  { %v467_v36 = vmul.f32 0.5, %v466_v35 }
 0x3d1   :  { %v447_v40 = vmul.f32 %v445_v39, %v442_v32  ;;  %v2111_v39 = vld [vmem:[%s2752_s3] sm:$0xff]  }
 0x3d2   :  { %v472_v44 = vmul.f32 %v470_v43, %v467_v36  ;;  %v2114_v43 = vld [vmem:[#allocation5 + $0x8] sm:$0xff]  }
 0x438   :  { %v450_v33 = vpop.permute.xlu0 %449 }
 0x439   :  { %v452_v34 = vmul.f32 %v450_v33, %v442_v32 }
 0x43b   :  { %454 = vrot.lane.b32.xlu0 %v452_v34, %s2285_s2 }
 0x43e   :  { %v475_v37 = vpop.permute.xlu1 %474 }
 0x43f   :  { %v477_v38 = vmul.f32 %v475_v37, %v467_v36 }
 0x441   :  { %479 = vrot.lane.b32.xlu1 %v477_v38, %s2285_s2 }
 0x4ad   :  { %v455_v41 = vpop.permute.xlu0 %454 }
 0x4ae   :  { %v2427_v42 = vadd.f32 %v455_v41, %v447_v40  ;;  %v2113_v40 = vld [vmem:[#allocation5] sm:$0xff]   ;;  %v2112_v41 = vld [vmem:[%s2752_s3 + $0x8] sm:$0xff]  }
 0x4b0   :  { %2155 = vtanh.f32 %v2427_v42  ;;  %v645_v30 = vrot.slane %v2427_v42, 6 }
 0x4b3   :  { %v480_v45 = vpop.permute.xlu1 %479 }
 0x4b4   :  { %v2431_v46 = vadd.f32 %v480_v45, %v472_v44 }
 0x4b6   :  { %2157 = vtanh.f32 %v2431_v46  ;;  %v670_v34 = vrot.slane %v2431_v46, 2 }
 0x4ba   :  { %v2156_v47 = vpop.eup %2155 }
 0x4bb   :  { %460 = vrot.lane.b32.xlu0 %v2156_v47, %s2280_s15 }
 0x4c0   :  { %v2158_v51 = vpop.eup %2157 }
 0x4c1   :  { %485 = vrot.lane.b32.xlu1 %v2158_v51, %s2280_s15 }
 0x52d   :  { %v461_v53 = vpop.permute.xlu0 %460 }
 0x52e   :  { %v2446_v54 = vmul.f32 %v461_v53, %v442_v32 }
 0x530   :  { %v502_v55 = vpack.c.bf16 %v2446_v54, %v2446_v54 }
 0x532   :  { %v508_v56 = vrot.slane %v502_v55, 1 }
 0x533   :  { %v486_v57 = vpop.permute.xlu1 %485 }
 0x534   :  { %v2450_v58 = vmul.f32 %v486_v57, %v467_v36  ;;  %509 = vrot.lane.b32.xlu0 %v508_v56, %s2285_s2 }
 0x536   :  { %v571_v59 = vpack.c.bf16 %v2450_v58, %v2450_v58 }
 0x538   :  { %v577_v60 = vrot.slane %v571_v59, 2  ;;  %v699_v59 = vld [vmem:[#allocation2] sm:$0xc0] }
 0x53a   :  { %578 = vrot.lane.b32.xlu1 %v577_v60, %s2285_s2 }
 0x5a6   :  { %v510_v61 = vpop.permute.xlu0 %509 }
 0x5a7   :  { %1979 = vmatmul.mubr.msk.bf16.vlgmr.msra.gmra.mrb[8].mxu1 %vm140_vm2, %v510_v61 }
 0x5a8   :  { %1994 = vmatprep.mubr.msk.bf16.mxu1 %vm2284_vm0, %v2283_v1  ;;  %1991 = vmatpush3.bf16.msra.mxu1 %v2111_v39 }
 0x5a9   :  { %1992 = vmatprep.subr.bf16.mxu1 %v2283_v1 }
 0x5ac   :  { %v579_v62 = vpop.permute.xlu1 %578  ;;  %1993 = vmatpush3.bf16.msra.mxu1 %v2112_v41 }
 0x5ad   :  { %1987 = vmatmul.mubr.msk.bf16.vlgmr.msra.gmra.mrb[12].mxu0 %vm140_vm2, %v579_v62  ;;  %2006 = vmatprep.subr.bf16.mxu1 %v2283_v1 }
 0x5ae   :  { %2002 = vmatprep.mubr.msk.bf16.mxu0 %vm2284_vm0, %v2283_v1  ;;  %1999 = vmatpush3.bf16.msra.mxu0 %v2113_v40 }
 0x5af   :  { %2000 = vmatprep.subr.bf16.mxu0 %v2283_v1 }
 0x5b2   :  { %2001 = vmatpush3.bf16.msra.mxu0 %v2114_v43 }
 0x5b3   :  { %2014 = vmatprep.subr.bf16.mxu0 %v2283_v1 }
 0x67a   :  { %v560_v63 = vpop.f32.mrb[8].mxu1 }
 0x67b   :  { %v567_v0 = vrot.slane %v560_v63, 4  ;;  %v1980_v2 = vpop.f32.mrb[9].mxu1  ;;  %v768_v63 = vld [vmem:[#allocation2 + $0x18] sm:$0x3] }
 0x67c   :  { %v563_v5 = vpop.f32.mrb[10].mxu1 }
 0x67d   :  { %v569_v7 = vadd.f32 %v567_v0, %v501_v4  ;;  %v1981_v8 = vpop.f32.mrb[11].mxu1 }
 0x67f   :  { %2159 = vtanh.f32 %v569_v7  ;;  %v639_v18 = vmul.f32 0.5, %v569_v7 }
 0x680   :  { %v629_v9 = vpop.f32.mrb[12].mxu0 }
 0x681   :  { %v636_v10 = vrot.slane %v629_v9, 6  ;;  %v1988_v11 = vpop.f32.mrb[13].mxu0 }
 0x682   :  { %v632_v13 = vpop.f32.mrb[14].mxu0 }
 0x683   :  { %v638_v14 = vadd.f32 %v636_v10, %v570_v12  ;;  %v1989_v15 = vpop.f32.mrb[15].mxu0 }
 0x685   :  { %2161 = vtanh.f32 %v638_v14  ;;  %v664_v19 = vmul.f32 0.5, %v638_v14 }
 0x686   :  { %2163 = vtanh.f32 %v639_v18 }
 0x687   :  { %2165 = vtanh.f32 %v664_v19 }
 0x689   :  { %v2160_v16 = vpop.eup %2159 }
 0x68a   :  { %649 = vrot.lane.b32.xlu0 %v2160_v16, %s2280_s15 }
 0x68f   :  { %v2162_v17 = vpop.eup %2161 }
 0x690   :  { %674 = vrot.lane.b32.xlu1 %v2162_v17, %s2280_s15  ;;  %v2164_v20 = vpop.eup %2163 }
 0x691   :  { %v641_v21 = vadd.f32 1.0, %v2164_v20  ;;  %v2166_v22 = vpop.eup %2165 }
 0x692   :  { %v666_v26 = vadd.f32 1.0, %v2166_v22 }
 0x693   :  { %v642_v23 = vmul.f32 0.5, %v641_v21 }
 0x694   :  { %v667_v27 = vmul.f32 0.5, %v666_v26 }
 0x695   :  { %v647_v31 = vmul.f32 %v645_v30, %v642_v23  ;;  %v2115_v30 = vld [vmem:[%s2752_s3] sm:$0xff]  }
 0x696   :  { %v672_v35 = vmul.f32 %v670_v34, %v667_v27 }
 0x6fc   :  { %v650_v24 = vpop.permute.xlu0 %649 }
 0x6fd   :  { %v652_v25 = vmul.f32 %v650_v24, %v642_v23 }
 0x6ff   :  { %654 = vrot.lane.b32.xlu0 %v652_v25, %s2285_s2 }
 0x702   :  { %v675_v28 = vpop.permute.xlu1 %674 }
 0x703   :  { %v677_v29 = vmul.f32 %v675_v28, %v667_v27 }
 0x705   :  { %679 = vrot.lane.b32.xlu1 %v677_v29, %s2285_s2 }
 0x771   :  { %v655_v32 = vpop.permute.xlu0 %654 }
 0x772   :  { %v2467_v33 = vadd.f32 %v655_v32, %v647_v31  ;;  %v2116_v31 = vld [vmem:[#allocation5] sm:$0xff]   ;;  %v2117_v32 = vld [vmem:[%s2752_s3 + $0x8] sm:$0xff]  }
 0x774   :  { %2167 = vtanh.f32 %v2467_v33  ;;  %v840_v22 = vrot.slane %v2467_v33, 6  ;;  %v2118_v33 = vld [vmem:[#allocation5 + $0x8] sm:$0xff]  }
 0x777   :  { %v680_v36 = vpop.permute.xlu1 %679 }
 0x778   :  { %v2471_v37 = vadd.f32 %v680_v36, %v672_v35 }
 0x77a   :  { %2169 = vtanh.f32 %v2471_v37  ;;  %v865_v25 = vrot.slane %v2471_v37, 2 }
 0x77e   :  { %v2168_v38 = vpop.eup %2167 }
 0x77f   :  { %660 = vrot.lane.b32.xlu0 %v2168_v38, %s2280_s15 }
 0x784   :  { %v2170_v42 = vpop.eup %2169 }
 0x785   :  { %685 = vrot.lane.b32.xlu1 %v2170_v42, %s2280_s15 }
 0x7f1   :  { %v661_v44 = vpop.permute.xlu0 %660 }
 0x7f2   :  { %v2486_v45 = vmul.f32 %v661_v44, %v642_v23 }
 0x7f4   :  { %v700_v46 = vpack.c.bf16 %v2486_v45, %v2486_v45 }
 0x7f6   :  { %v706_v47 = vrot.slane %v700_v46, 2  ;;  %v894_v46 = vld [vmem:[#allocation2 + $0x10] sm:$0x3] }
 0x7f7   :  { %v686_v48 = vpop.permute.xlu1 %685 }
 0x7f8   :  { %v2490_v49 = vmul.f32 %v686_v48, %v667_v27  ;;  %707 = vrot.lane.b32.xlu0 %v706_v47, %s2285_s2 }
 0x7fa   :  { %v769_v50 = vpack.c.bf16 %v2490_v49, %v2490_v49 }
 0x7fc   :  { %v775_v51 = vrot.slane %v769_v50, 1 }
 0x7fe   :  { %776 = vrot.lane.b32.xlu1 %v775_v51, %s2285_s2 }
 0x86a   :  { %v708_v52 = vpop.permute.xlu0 %707 }
 0x86b   :  { %1995 = vmatmul.mubr.msk.bf16.vlgmr.msra.gmra.mrb[12].mxu1 %vm140_vm2, %v708_v52 }
 0x86c   :  { %2010 = vmatprep.mubr.msk.bf16.mxu1 %vm2284_vm0, %v2283_v1  ;;  %2007 = vmatpush3.bf16.msra.mxu1 %v2115_v30 }
 0x86d   :  { %2008 = vmatprep.subr.bf16.mxu1 %v2283_v1 }
 0x870   :  { %v777_v53 = vpop.permute.xlu1 %776  ;;  %2009 = vmatpush3.bf16.msra.mxu1 %v2117_v32 }
 0x871   :  { %2003 = vmatmul.mubr.msk.bf16.vlgmr.msra.gmra.mrb[16].mxu0 %vm140_vm2, %v777_v53  ;;  %2022 = vmatprep.subr.bf16.mxu1 %v2283_v1 }
 0x872   :  { %2018 = vmatprep.mubr.msk.bf16.mxu0 %vm2284_vm0, %v2283_v1  ;;  %2015 = vmatpush3.bf16.msra.mxu0 %v2116_v31 }
 0x873   :  { %2016 = vmatprep.subr.bf16.mxu0 %v2283_v1 }
 0x876   :  { %2017 = vmatpush3.bf16.msra.mxu0 %v2118_v33 }
 0x877   :  { %2030 = vmatprep.subr.bf16.mxu0 %v2283_v1 }
 0x93e   :  { %v758_v55 = vpop.f32.mrb[12].mxu1 }
 0x93f   :  { %v765_v56 = vrot.slane %v758_v55, 2  ;;  %v1996_v57 = vpop.f32.mrb[13].mxu1 }
 0x940   :  { %v761_v60 = vpop.f32.mrb[14].mxu1  ;;  %v960_v57 = vld [vmem:[#allocation2 + $0x8] sm:$0xc0] }
 0x941   :  { %v767_v61 = vadd.f32 %v765_v56, %v699_v59  ;;  %v1997_v62 = vpop.f32.mrb[15].mxu1 }
 0x943   :  { %2171 = vtanh.f32 %v767_v61  ;;  %v834_v10 = vmul.f32 0.5, %v767_v61 }
 0x944   :  { %v827_v0 = vpop.f32.mrb[16].mxu0 }
 0x945   :  { %v833_v2 = vadd.f32 %v827_v0, %v768_v63  ;;  %v2004_v4 = vpop.f32.mrb[17].mxu0 }
 0x946   :  { %v830_v5 = vpop.f32.mrb[18].mxu0 }
 0x947   :  { %2173 = vtanh.f32 %v833_v2  ;;  %v2005_v7 = vpop.f32.mrb[19].mxu0  ;;  %v859_v11 = vmul.f32 0.5, %v833_v2 }
 0x948   :  { %2175 = vtanh.f32 %v834_v10 }
 0x949   :  { %2177 = vtanh.f32 %v859_v11 }
 0x94d   :  { %v2172_v8 = vpop.eup %2171 }
 0x94e   :  { %844 = vrot.lane.b32.xlu0 %v2172_v8, %s2280_s15 }
 0x951   :  { %v2174_v9 = vpop.eup %2173 }
 0x952   :  { %869 = vrot.lane.b32.xlu1 %v2174_v9, %s2280_s15  ;;  %v2176_v12 = vpop.eup %2175 }
 0x953   :  { %v836_v13 = vadd.f32 1.0, %v2176_v12  ;;  %v2178_v14 = vpop.eup %2177 }
 0x954   :  { %v861_v16 = vadd.f32 1.0, %v2178_v14 }
 0x955   :  { %v837_v15 = vmul.f32 0.5, %v836_v13 }
 0x956   :  { %v862_v19 = vmul.f32 0.5, %v861_v16 }
 0x957   :  { %v842_v23 = vmul.f32 %v840_v22, %v837_v15 }
 0x958   :  { %v867_v27 = vmul.f32 %v865_v25, %v862_v19 }
 0x9c0   :  { %v845_v17 = vpop.permute.xlu0 %844 }
 0x9c1   :  { %v847_v18 = vmul.f32 %v845_v17, %v837_v15 }
 0x9c3   :  { %849 = vrot.lane.b32.xlu0 %v847_v18, %s2285_s2 }
 0x9c4   :  { %v870_v20 = vpop.permute.xlu1 %869 }
 0x9c5   :  { %v872_v21 = vmul.f32 %v870_v20, %v862_v19 }
 0x9c7   :  { %874 = vrot.lane.b32.xlu1 %v872_v21, %s2285_s2 }
 0xa35   :  { %v850_v24 = vpop.permute.xlu0 %849 }
 0xa36   :  { %v2508_v26 = vadd.f32 %v850_v24, %v842_v23  ;;  %v2119_v23 = vld [vmem:[%s2752_s3] sm:$0xff]  }
 0xa37   :  { %v2121_v24 = vld [vmem:[#allocation5] sm:$0xff]  }
 0xa38   :  { %2179 = vtanh.f32 %v2508_v26 }
 0xa39   :  { %v875_v28 = vpop.permute.xlu1 %874 }
 0xa3a   :  { %v2511_v29 = vadd.f32 %v875_v28, %v867_v27  ;;  %v2122_v28 = vld [vmem:[#allocation5 + $0x8] sm:$0xff]  }
 0xa3c   :  { %2181 = vtanh.f32 %v2511_v29  ;;  %v1059_v18 = vrot.slane %v2511_v29, 2 }
 0xa42   :  { %v2180_v34 = vpop.eup %2179 }
 0xa43   :  { %855 = vrot.lane.b32.xlu0 %v2180_v34, %s2280_s15 }
 0xa46   :  { %v2182_v35 = vpop.eup %2181 }
 0xa47   :  { %880 = vrot.lane.b32.xlu1 %v2182_v35, %s2280_s15 }
 0xab5   :  { %v856_v36 = vpop.permute.xlu0 %855 }
 0xab6   :  { %v2526_v37 = vmul.f32 %v856_v36, %v837_v15  ;;  %v1034_v15 = vrot.slane %v2508_v26, 6  ;;  %v2120_v26 = vld [vmem:[%s2752_s3 + $0x8] sm:$0xff]  }
 0xab8   :  { %v895_v38 = vpack.c.bf16 %v2526_v37, %v2526_v37 }
 0xab9   :  { %v881_v39 = vpop.permute.xlu1 %880 }
 0xaba   :  { %v901_v40 = vrot.slane %v895_v38, 3  ;;  %v2530_v41 = vmul.f32 %v881_v39, %v862_v19 }
 0xabc   :  { %v961_v42 = vpack.c.bf16 %v2530_v41, %v2530_v41  ;;  %902 = vrot.lane.b32.xlu1 %v901_v40, %s2285_s2 }
 0xabe   :  { %967 = vrot.lane.b32.xlu0 %v961_v42, %s2285_s2 }
 0xb2e   :  { %v903_v43 = vpop.permute.xlu1 %902 }
 0xb2f   :  { %2011 = vmatmul.mubr.msk.bf16.vlgmr.msra.gmra.mrb[16].mxu1 %vm140_vm2, %v903_v43  ;;  %v1088_v43 = vld [vmem:[#allocation2 + $0x10] sm:$0xc] }
 0xb30   :  { %v968_v44 = vpop.permute.xlu0 %967  ;;  %2026 = vmatprep.mubr.msk.bf16.mxu1 %vm2284_vm0, %v2283_v1  ;;  %2023 = vmatpush3.bf16.msra.mxu1 %v2119_v23 }
 0xb31   :  { %2019 = vmatmul.mubr.msk.bf16.vlgmr.msra.gmra.mrb[20].mxu0 %vm140_vm2, %v968_v44  ;;  %2024 = vmatprep.subr.bf16.mxu1 %v2283_v1 }
 0xb32   :  { %2034 = vmatprep.mubr.msk.bf16.mxu0 %vm2284_vm0, %v2283_v1  ;;  %2031 = vmatpush3.bf16.msra.mxu0 %v2121_v24  ;;  %v2126_v24 = vld [vmem:[#allocation5 + $0x8] sm:$0xff]  }
 0xb33   :  { %2032 = vmatprep.subr.bf16.mxu0 %v2283_v1 }
 0xb34   :  { %2025 = vmatpush3.bf16.msra.mxu1 %v2120_v26 }
 0xb35   :  { %2038 = vmatprep.subr.bf16.mxu1 %v2283_v1 }
 0xb36   :  { %2033 = vmatpush3.bf16.msra.mxu0 %v2122_v28 }
 0xb37   :  { %2046 = vmatprep.subr.bf16.mxu0 %v2283_v1 }
 0xc02   :  { %v953_v47 = vpop.f32.mrb[16].mxu1 }
 0xc03   :  { %v959_v48 = vadd.f32 %v953_v47, %v894_v46  ;;  %v2012_v50 = vpop.f32.mrb[17].mxu1 }
 0xc04   :  { %v956_v51 = vpop.f32.mrb[18].mxu1  ;;  %v1018_v52 = vpop.f32.mrb[20].mxu0 }
 0xc05   :  { %2183 = vtanh.f32 %v959_v48  ;;  %v1025_v53 = vrot.slane %v1018_v52, 2  ;;  %v2013_v55 = vpop.f32.mrb[19].mxu1  ;;  %v2020_v56 = vpop.f32.mrb[21].mxu0  ;;  %v1028_v0 = vmul.f32 0.5, %v959_v48  ;;  %v1156_v52 = vld [vmem:[#allocation2 + $0x8] sm:$0x30] }
 0xc06   :  { %v1021_v59 = vpop.f32.mrb[22].mxu0 }
 0xc07   :  { %v1027_v60 = vadd.f32 %v1025_v53, %v960_v57  ;;  %v2021_v61 = vpop.f32.mrb[23].mxu0 }
 0xc09   :  { %2185 = vtanh.f32 %v1027_v60  ;;  %v1053_v2 = vmul.f32 0.5, %v1027_v60 }
 0xc0a   :  { %2187 = vtanh.f32 %v1028_v0 }
 0xc0b   :  { %2189 = vtanh.f32 %v1053_v2 }
 0xc0f   :  { %v2184_v62 = vpop.eup %2183 }
 0xc10   :  { %1038 = vrot.lane.b32.xlu0 %v2184_v62, %s2280_s15 }
 0xc13   :  { %v2186_v63 = vpop.eup %2185 }
 0xc14   :  { %1063 = vrot.lane.b32.xlu1 %v2186_v63, %s2280_s15  ;;  %v2188_v4 = vpop.eup %2187 }
 0xc15   :  { %v1030_v5 = vadd.f32 1.0, %v2188_v4  ;;  %v2190_v7 = vpop.eup %2189 }
 0xc16   :  { %v1055_v9 = vadd.f32 1.0, %v2190_v7 }
 0xc17   :  { %v1031_v8 = vmul.f32 0.5, %v1030_v5 }
 0xc18   :  { %v1056_v12 = vmul.f32 0.5, %v1055_v9 }
 0xc19   :  { %v1036_v16 = vmul.f32 %v1034_v15, %v1031_v8 }
 0xc1a   :  { %v1061_v20 = vmul.f32 %v1059_v18, %v1056_v12 }
 0xc82   :  { %v1039_v10 = vpop.permute.xlu0 %1038 }
 0xc83   :  { %v1041_v11 = vmul.f32 %v1039_v10, %v1031_v8 }
 0xc85   :  { %1043 = vrot.lane.b32.xlu0 %v1041_v11, %s2285_s2 }
 0xc86   :  { %v1064_v13 = vpop.permute.xlu1 %1063 }
 0xc87   :  { %v1066_v14 = vmul.f32 %v1064_v13, %v1056_v12 }
 0xc89   :  { %1068 = vrot.lane.b32.xlu1 %v1066_v14, %s2285_s2 }
 0xcf7   :  { %v1044_v17 = vpop.permute.xlu0 %1043 }
 0xcf8   :  { %v2548_v19 = vadd.f32 %v1044_v17, %v1036_v16 }
 0xcfa   :  { %2191 = vtanh.f32 %v2548_v19  ;;  %v1231_v11 = vrot.slane %v2548_v19, 6  ;;  %v2125_v19 = vld [vmem:[#allocation5] sm:$0xff]  }
 0xcfb   :  { %v1069_v21 = vpop.permute.xlu1 %1068 }
 0xcfc   :  { %v2551_v22 = vadd.f32 %v1069_v21, %v1061_v20  ;;  %v2123_v21 = vld [vmem:[%s2752_s3] sm:$0xff]  }
 0xcfe   :  { %2193 = vtanh.f32 %v2551_v22  ;;  %v1256_v15 = vrot.slane %v2551_v22, 2  ;;  %v2124_v22 = vld [vmem:[%s2752_s3 + $0x8] sm:$0xff]  }
 0xd04   :  { %v2192_v25 = vpop.eup %2191 }
 0xd05   :  { %1049 = vrot.lane.b32.xlu0 %v2192_v25, %s2280_s15 }
 0xd08   :  { %v2194_v27 = vpop.eup %2193 }
 0xd09   :  { %1074 = vrot.lane.b32.xlu1 %v2194_v27, %s2280_s15 }
 0xd77   :  { %v1050_v29 = vpop.permute.xlu0 %1049 }
 0xd78   :  { %v2566_v30 = vmul.f32 %v1050_v29, %v1031_v8 }
 0xd7a   :  { %v1089_v31 = vpack.c.bf16 %v2566_v30, %v2566_v30 }
 0xd7b   :  { %v1075_v32 = vpop.permute.xlu1 %1074 }
 0xd7c   :  { %v2570_v33 = vmul.f32 %v1075_v32, %v1056_v12  ;;  %1095 = vrot.lane.b32.xlu0 %v1089_v31, %s2285_s2 }
 0xd7e   :  { %v1157_v34 = vpack.c.bf16 %v2570_v33, %v2570_v33 }
 0xd80   :  { %v1163_v35 = vrot.slane %v1157_v34, 3 }
 0xd82   :  { %1164 = vrot.lane.b32.xlu1 %v1163_v35, %s2285_s2 }
 0xdee   :  { %v1096_v36 = vpop.permute.xlu0 %1095 }
 0xdef   :  { %2027 = vmatmul.mubr.msk.bf16.vlgmr.msra.gmra.mrb[20].mxu1 %vm140_vm2, %v1096_v36 }
 0xdf0   :  { %2042 = vmatprep.mubr.msk.bf16.mxu1 %vm2284_vm0, %v2283_v1  ;;  %2039 = vmatpush3.bf16.msra.mxu1 %v2123_v21 }
 0xdf1   :  { %2040 = vmatprep.subr.bf16.mxu1 %v2283_v1 }
 0xdf4   :  { %v1165_v38 = vpop.permute.xlu1 %1164  ;;  %2041 = vmatpush3.bf16.msra.mxu1 %v2124_v22 }
 0xdf5   :  { %2035 = vmatmul.mubr.msk.bf16.vlgmr.msra.gmra.mrb[24].mxu0 %vm140_vm2, %v1165_v38  ;;  %2054 = vmatprep.subr.bf16.mxu1 %v2283_v1 }
 0xdf6   :  { %2050 = vmatprep.mubr.msk.bf16.mxu0 %vm2284_vm0, %v2283_v1  ;;  %2047 = vmatpush3.bf16.msra.mxu0 %v2125_v19  ;;  %v2127_v19 = vld [vmem:[%s2752_s3] sm:$0xff]  }
 0xdf7   :  { %2048 = vmatprep.subr.bf16.mxu0 %v2283_v1 }
 0xdfa   :  { %2049 = vmatpush3.bf16.msra.mxu0 %v2126_v24 }
 0xdfb   :  { %2062 = vmatprep.subr.bf16.mxu0 %v2283_v1 }
 0xec2   :  { %v1146_v39 = vpop.f32.mrb[20].mxu1 }
 0xec3   :  { %v1153_v40 = vrot.slane %v1146_v39, 6  ;;  %v2028_v42 = vpop.f32.mrb[21].mxu1 }
 0xec4   :  { %v1149_v44 = vpop.f32.mrb[22].mxu1  ;;  %v1285_v42 = vld [vmem:[#allocation2 + $0x10] sm:$0x30] }
 0xec5   :  { %v1155_v46 = vadd.f32 %v1153_v40, %v1088_v43  ;;  %v2029_v47 = vpop.f32.mrb[23].mxu1 }
 0xec7   :  { %2195 = vtanh.f32 %v1155_v46  ;;  %v1225_v60 = vmul.f32 0.5, %v1155_v46 }
 0xec8   :  { %v1215_v48 = vpop.f32.mrb[24].mxu0 }
 0xec9   :  { %v1222_v50 = vrot.slane %v1215_v48, 4  ;;  %v2036_v51 = vpop.f32.mrb[25].mxu0 }
 0xeca   :  { %v1218_v53 = vpop.f32.mrb[26].mxu0  ;;  %v1354_v51 = vld [vmem:[#allocation2 + $0x8] sm:$0xc] }
 0xecb   :  { %v1224_v55 = vadd.f32 %v1222_v50, %v1156_v52  ;;  %v2037_v56 = vpop.f32.mrb[27].mxu0 }
 0xecd   :  { %2197 = vtanh.f32 %v1224_v55  ;;  %v1250_v61 = vmul.f32 0.5, %v1224_v55 }
 0xece   :  { %2199 = vtanh.f32 %v1225_v60 }
 0xecf   :  { %2201 = vtanh.f32 %v1250_v61 }
 0xed1   :  { %v2196_v57 = vpop.eup %2195 }
 0xed2   :  { %1235 = vrot.lane.b32.xlu0 %v2196_v57, %s2280_s15 }
 0xed7   :  { %v2198_v59 = vpop.eup %2197 }
 0xed8   :  { %1260 = vrot.lane.b32.xlu1 %v2198_v59, %s2280_s15  ;;  %v2200_v62 = vpop.eup %2199 }
 0xed9   :  { %v1227_v63 = vadd.f32 1.0, %v2200_v62  ;;  %v2202_v0 = vpop.eup %2201 }
 0xeda   :  { %v1252_v7 = vadd.f32 1.0, %v2202_v0 }
 0xedb   :  { %v1228_v2 = vmul.f32 0.5, %v1227_v63 }
 0xedc   :  { %v1253_v8 = vmul.f32 0.5, %v1252_v7 }
 0xedd   :  { %v1233_v12 = vmul.f32 %v1231_v11, %v1228_v2 }
 0xede   :  { %v1258_v16 = vmul.f32 %v1256_v15, %v1253_v8 }
 0xf44   :  { %v1236_v4 = vpop.permute.xlu0 %1235 }
 0xf45   :  { %v1238_v5 = vmul.f32 %v1236_v4, %v1228_v2 }
 0xf47   :  { %1240 = vrot.lane.b32.xlu0 %v1238_v5, %s2285_s2 }
 0xf4a   :  { %v1261_v9 = vpop.permute.xlu1 %1260 }
 0xf4b   :  { %v1263_v10 = vmul.f32 %v1261_v9, %v1253_v8 }
 0xf4d   :  { %1265 = vrot.lane.b32.xlu1 %v1263_v10, %s2285_s2 }
 0xfb9   :  { %v1241_v13 = vpop.permute.xlu0 %1240 }
 0xfba   :  { %v2587_v14 = vadd.f32 %v1241_v13, %v1233_v12 }
 0xfbc   :  { %2203 = vtanh.f32 %v2587_v14  ;;  %v1429_v10 = vrot.slane %v2587_v14, 6  ;;  %v2129_v14 = vld [vmem:[#allocation5] sm:$0xff]  }
 0xfbf   :  { %v1266_v17 = vpop.permute.xlu1 %1265 }
 0xfc0   :  { %v2591_v18 = vadd.f32 %v1266_v17, %v1258_v16 }
 0xfc2   :  { %2205 = vtanh.f32 %v2591_v18  ;;  %v1454_v15 = vrot.slane %v2591_v18, 2  ;;  %v2128_v18 = vld [vmem:[%s2752_s3 + $0x8] sm:$0xff]  }
 0xfc6   :  { %v2204_v20 = vpop.eup %2203 }
 0xfc7   :  { %1246 = vrot.lane.b32.xlu0 %v2204_v20, %s2280_s15 }
 0xfcc   :  { %v2206_v23 = vpop.eup %2205 }
 0xfcd   :  { %1271 = vrot.lane.b32.xlu1 %v2206_v23, %s2280_s15  ;;  %v2130_v23 = vld [vmem:[#allocation5 + $0x8] sm:$0xff]  }
0x1039   :  { %v1247_v25 = vpop.permute.xlu0 %1246 }
0x103a   :  { %v2606_v26 = vmul.f32 %v1247_v25, %v1228_v2 }
0x103c   :  { %v1286_v27 = vpack.c.bf16 %v2606_v26, %v2606_v26 }
0x103e   :  { %v1292_v28 = vrot.slane %v1286_v27, 1 }
0x103f   :  { %v1272_v29 = vpop.permute.xlu1 %1271 }
0x1040   :  { %v2610_v31 = vmul.f32 %v1272_v29, %v1253_v8  ;;  %1293 = vrot.lane.b32.xlu0 %v1292_v28, %s2285_s2 }
0x1042   :  { %v1355_v32 = vpack.c.bf16 %v2610_v31, %v2610_v31 }
0x1044   :  { %v1361_v34 = vrot.slane %v1355_v32, 2 }
0x1046   :  { %1362 = vrot.lane.b32.xlu1 %v1361_v34, %s2285_s2 }
0x10b2   :  { %v1294_v35 = vpop.permute.xlu0 %1293 }
0x10b3   :  { %2043 = vmatmul.mubr.msk.bf16.vlgmr.msra.gmra.mrb[24].mxu1 %vm140_vm2, %v1294_v35 }
0x10b4   :  { %2058 = vmatprep.mubr.msk.bf16.mxu1 %vm2284_vm0, %v2283_v1  ;;  %2055 = vmatpush3.bf16.msra.mxu1 %v2127_v19 }
0x10b5   :  { %2056 = vmatprep.subr.bf16.mxu1 %v2283_v1 }
0x10b8   :  { %v1363_v36 = vpop.permute.xlu1 %1362  ;;  %2057 = vmatpush3.bf16.msra.mxu1 %v2128_v18 }
0x10b9   :  { %2051 = vmatmul.mubr.msk.bf16.vlgmr.msra.gmra.mrb[28].mxu0 %vm140_vm2, %v1363_v36  ;;  %2070 = vmatprep.subr.bf16.mxu1 %v2283_v1 }
0x10ba   :  { %2066 = vmatprep.mubr.msk.bf16.mxu0 %vm2284_vm0, %v2283_v1  ;;  %2063 = vmatpush3.bf16.msra.mxu0 %v2129_v14 }
0x10bb   :  { %2064 = vmatprep.subr.bf16.mxu0 %v2283_v1 }
0x10be   :  { %2065 = vmatpush3.bf16.msra.mxu0 %v2130_v23 }
0x10bf   :  { %2078 = vmatprep.subr.bf16.mxu0 %v2283_v1 }
0x1186   :  { %v1344_v38 = vpop.f32.mrb[24].mxu1 }
0x1187   :  { %v1351_v39 = vrot.slane %v1344_v38, 4  ;;  %v2044_v40 = vpop.f32.mrb[25].mxu1 }
0x1188   :  { %v1347_v43 = vpop.f32.mrb[26].mxu1 }
0x1189   :  { %v1353_v44 = vadd.f32 %v1351_v39, %v1285_v42  ;;  %v2045_v46 = vpop.f32.mrb[27].mxu1  ;;  %v1483_v43 = vld [vmem:[#allocation2 + $0x10] sm:$0xc0] }
0x118b   :  { %2207 = vtanh.f32 %v1353_v44  ;;  %v1423_v59 = vmul.f32 0.5, %v1353_v44 }
0x118c   :  { %v1413_v47 = vpop.f32.mrb[28].mxu0 }
0x118d   :  { %v1420_v48 = vrot.slane %v1413_v47, 6  ;;  %v2052_v50 = vpop.f32.mrb[29].mxu0 }
0x118e   :  { %v1416_v52 = vpop.f32.mrb[30].mxu0 }
0x118f   :  { %v1422_v53 = vadd.f32 %v1420_v48, %v1354_v51  ;;  %v2053_v55 = vpop.f32.mrb[31].mxu0  ;;  %v1552_v48 = vld [vmem:[#allocation2 + $0x8] sm:$0x3] }
0x1191   :  { %2209 = vtanh.f32 %v1422_v53  ;;  %v1448_v60 = vmul.f32 0.5, %v1422_v53 }
0x1192   :  { %2211 = vtanh.f32 %v1423_v59 }
0x1193   :  { %2213 = vtanh.f32 %v1448_v60 }
0x1195   :  { %v2208_v56 = vpop.eup %2207 }
0x1196   :  { %1433 = vrot.lane.b32.xlu0 %v2208_v56, %s2280_s15 }
0x119b   :  { %v2210_v57 = vpop.eup %2209 }
0x119c   :  { %1458 = vrot.lane.b32.xlu1 %v2210_v57, %s2280_s15  ;;  %v2212_v61 = vpop.eup %2211 }
0x119d   :  { %v1425_v62 = vadd.f32 1.0, %v2212_v61  ;;  %v2214_v63 = vpop.eup %2213 }
0x119e   :  { %v1450_v5 = vadd.f32 1.0, %v2214_v63 }
0x119f   :  { %v1426_v0 = vmul.f32 0.5, %v1425_v62 }
0x11a0   :  { %v1451_v7 = vmul.f32 0.5, %v1450_v5 }
0x11a1   :  { %v1431_v11 = vmul.f32 %v1429_v10, %v1426_v0 }
0x11a2   :  { %v1456_v16 = vmul.f32 %v1454_v15, %v1451_v7 }
0x1208   :  { %v1434_v2 = vpop.permute.xlu0 %1433 }
0x1209   :  { %v1436_v4 = vmul.f32 %v1434_v2, %v1426_v0 }
0x120b   :  { %1438 = vrot.lane.b32.xlu0 %v1436_v4, %s2285_s2 }
0x120e   :  { %v1459_v8 = vpop.permute.xlu1 %1458 }
0x120f   :  { %v1461_v9 = vmul.f32 %v1459_v8, %v1451_v7 }
0x1211   :  { %1463 = vrot.lane.b32.xlu1 %v1461_v9, %s2285_s2 }
0x127d   :  { %v1439_v12 = vpop.permute.xlu0 %1438 }
0x127e   :  { %v2627_v13 = vadd.f32 %v1439_v12, %v1431_v11 }
0x1280   :  { %2215 = vtanh.f32 %v2627_v13  ;;  %v1624_v10 = vrot.slane %v2627_v13, 6 }
0x1283   :  { %v1464_v17 = vpop.permute.xlu1 %1463 }
0x1284   :  { %v2631_v20 = vadd.f32 %v1464_v17, %v1456_v16 }
0x1286   :  { %2217 = vtanh.f32 %v2631_v20  ;;  %v1649_v15 = vrot.slane %v2631_v20, 2 }
0x128a   :  { %v2216_v21 = vpop.eup %2215 }
0x128b   :  { %1444 = vrot.lane.b32.xlu0 %v2216_v21, %s2280_s15 }
0x1290   :  { %v2218_v22 = vpop.eup %2217 }
0x1291   :  { %1469 = vrot.lane.b32.xlu1 %v2218_v22, %s2280_s15 }
0x12fd   :  { %v1445_v24 = vpop.permute.xlu0 %1444 }
0x12fe   :  { %v2646_v25 = vmul.f32 %v1445_v24, %v1426_v0 }
0x1300   :  { %v1484_v27 = vpack.c.bf16 %v2646_v25, %v2646_v25 }
0x1302   :  { %v1490_v28 = vrot.slane %v1484_v27, 2 }
0x1303   :  { %v1470_v29 = vpop.permute.xlu1 %1469 }
0x1304   :  { %v2650_v32 = vmul.f32 %v1470_v29, %v1451_v7  ;;  %1491 = vrot.lane.b32.xlu0 %v1490_v28, %s2285_s2 }
0x1306   :  { %v1553_v34 = vpack.c.bf16 %v2650_v32, %v2650_v32 }
0x1308   :  { %v1559_v35 = vrot.slane %v1553_v34, 1 }
0x130a   :  { %1560 = vrot.lane.b32.xlu1 %v1559_v35, %s2285_s2 }
0x1376   :  { %v1492_v36 = vpop.permute.xlu0 %1491 }
0x1377   :  { %2059 = vmatmul.mubr.msk.bf16.vlgmr.msra.gmra.mrb[28].mxu1 %vm140_vm2, %v1492_v36 }
0x1378   :  { %2074 = vmatprep.mubr.msk.bf16.mxu1 %vm2284_vm0, %v2283_v1 }
0x137c   :  { %v1561_v38 = vpop.permute.xlu1 %1560 }
0x137d   :  { %2067 = vmatmul.mubr.msk.bf16.vlgmr.msra.gmra.mrb[32].mxu0 %vm140_vm2, %v1561_v38 }
0x137e   :  { %2082 = vmatprep.mubr.msk.bf16.mxu0 %vm2284_vm0, %v2283_v1 }
0x144a   :  { %v1542_v39 = vpop.f32.mrb[28].mxu1 }
0x144b   :  { %v1549_v40 = vrot.slane %v1542_v39, 2  ;;  %v2060_v42 = vpop.f32.mrb[29].mxu1 }
0x144c   :  { %v1545_v44 = vpop.f32.mrb[30].mxu1 }
0x144d   :  { %v1551_v46 = vadd.f32 %v1549_v40, %v1483_v43  ;;  %v2061_v47 = vpop.f32.mrb[31].mxu1 }
0x144f   :  { %2219 = vtanh.f32 %v1551_v46  ;;  %v1618_v59 = vmul.f32 0.5, %v1551_v46 }
0x1450   :  { %v1611_v50 = vpop.f32.mrb[32].mxu0 }
0x1451   :  { %v1617_v51 = vadd.f32 %v1611_v50, %v1552_v48  ;;  %v2068_v52 = vpop.f32.mrb[33].mxu0  ;;  %v1887_v50 = vld [vmem:[%s2756_s7] ss:$0 sm:$0xff] }
0x1452   :  { %v1614_v53 = vpop.f32.mrb[34].mxu0 }
0x1453   :  { %2221 = vtanh.f32 %v1617_v51  ;;  %v2069_v55 = vpop.f32.mrb[35].mxu0  ;;  %v1643_v60 = vmul.f32 0.5, %v1617_v51 }
0x1454   :  { %2223 = vtanh.f32 %v1618_v59 }
0x1455   :  { %2225 = vtanh.f32 %v1643_v60 }
0x1459   :  { %v2220_v56 = vpop.eup %2219 }
0x145a   :  { %1628 = vrot.lane.b32.xlu0 %v2220_v56, %s2280_s15 }
0x145d   :  { %v2222_v57 = vpop.eup %2221 }
0x145e   :  { %1653 = vrot.lane.b32.xlu1 %v2222_v57, %s2280_s15  ;;  %v2224_v61 = vpop.eup %2223 }
0x145f   :  { %v1620_v62 = vadd.f32 1.0, %v2224_v61  ;;  %v2226_v63 = vpop.eup %2225 }
0x1460   :  { %v1645_v2 = vadd.f32 1.0, %v2226_v63 }
0x1461   :  { %v1621_v0 = vmul.f32 0.5, %v1620_v62 }
0x1462   :  { %v1646_v7 = vmul.f32 0.5, %v1645_v2 }
0x1463   :  { %v1626_v11 = vmul.f32 %v1624_v10, %v1621_v0 }
0x1464   :  { %v1651_v17 = vmul.f32 %v1649_v15, %v1646_v7 }
0x14cc   :  { %v1629_v4 = vpop.permute.xlu0 %1628 }
0x14cd   :  { %v1631_v5 = vmul.f32 %v1629_v4, %v1621_v0 }
0x14cf   :  { %1633 = vrot.lane.b32.xlu0 %v1631_v5, %s2285_s2 }
0x14d0   :  { %v1654_v8 = vpop.permute.xlu1 %1653 }
0x14d1   :  { %v1656_v9 = vmul.f32 %v1654_v8, %v1646_v7 }
0x14d3   :  { %1658 = vrot.lane.b32.xlu1 %v1656_v9, %s2285_s2 }
0x1541   :  { %v1634_v12 = vpop.permute.xlu0 %1633 }
0x1542   :  { %v1636_v16 = vadd.f32 %v1634_v12, %v1626_v11 }
0x1544   :  { %2227 = vtanh.f32 %v1636_v16 }
0x1545   :  { %v1659_v21 = vpop.permute.xlu1 %1658 }
0x1546   :  { %v1661_v19 = vadd.f32 %v1659_v21, %v1651_v17 }
0x1548   :  { %2229 = vtanh.f32 %v1661_v19 }
0x154e   :  { %v2228_v14 = vpop.eup %2227 }
0x154f   :  { %1639 = vrot.lane.b32.xlu0 %v2228_v14, %s2280_s15 }
0x1552   :  { %v2230_v18 = vpop.eup %2229 }
0x1553   :  { %1664 = vrot.lane.b32.xlu1 %v2230_v18, %s2280_s15  ;;  %291 = vrot.lane.b32.xlu0 %v2406_v3, %s2285_s2  ;;  %v2131_v3 = vld [vmem:[%s2754_s5] sm:$0xff]  }
0x1554   :  { %2079 = vmatpush3.bf16.msra.mxu0 %v2131_v3 }
0x1555   :  { %2080 = vmatprep.subr.bf16.mxu0 %v2283_v1 }
0x1557   :  { %297 = vrot.lane.b32.xlu1 %v2410_v6, %s2285_s2  ;;  %490 = vrot.lane.b32.xlu0 %v2446_v54, %s2285_s2  ;;  %v2132_v6 = vld [vmem:[%s2755_s6] sm:$0xff]   ;;  %v2133_v54 = vld [vmem:[%s2754_s5 + $0x8] sm:$0xff]  }
0x1558   :  { %2071 = vmatpush3.bf16.msra.mxu1 %v2132_v6  ;;  %2081 = vmatpush3.bf16.msra.mxu0 %v2133_v54 }
0x1559   :  { %2072 = vmatprep.subr.bf16.mxu1 %v2283_v1 }
0x155b   :  { %496 = vrot.lane.b32.xlu1 %v2450_v58, %s2285_s2  ;;  %690 = vrot.lane.b32.xlu0 %v2486_v45, %s2285_s2  ;;  %v2134_v58 = vld [vmem:[%s2755_s6 + $0x8] sm:$0xff]  }
0x155c   :  { %2073 = vmatpush3.bf16.msra.mxu1 %v2134_v58 }
0x155f   :  { %695 = vrot.lane.b32.xlu1 %v2490_v49, %s2285_s2  ;;  %885 = vrot.lane.b32.xlu0 %v2526_v37, %s2285_s2 }
0x1563   :  { %890 = vrot.lane.b32.xlu1 %v2530_v41, %s2285_s2  ;;  %1079 = vrot.lane.b32.xlu0 %v2566_v30, %s2285_s2 }
0x1567   :  { %1084 = vrot.lane.b32.xlu1 %v2570_v33, %s2285_s2  ;;  %1276 = vrot.lane.b32.xlu0 %v2606_v26, %s2285_s2 }
0x156b   :  { %1281 = vrot.lane.b32.xlu1 %v2610_v31, %s2285_s2  ;;  %1474 = vrot.lane.b32.xlu0 %v2646_v25, %s2285_s2 }
0x156f   :  { %1479 = vrot.lane.b32.xlu1 %v2650_v32, %s2285_s2 }
0x15c1   :  { %v1640_v45 = vpop.permute.xlu0 %1639 }
0x15c2   :  { %v1642_v49 = vmul.f32 %v1640_v45, %v1621_v0 }
0x15c4   :  { %1669 = vrot.lane.b32.xlu0 %v1642_v49, %s2285_s2 }
0x15c5   :  { %v1665_v37 = vpop.permute.xlu1 %1664  ;;  %v292_v41 = vpop.permute.xlu0 %291 }
0x15c6   :  { %v1667_v30 = vmul.f32 %v1665_v37, %v1646_v7  ;;  %295 = vst.msk [vmem:[#allocation3] sm:$0x3] %vm294_vm3, %v292_v41 }
0x15c8   :  { %1674 = vrot.lane.b32.xlu1 %v1667_v30, %s2285_s2  ;;  %s2286_s2 = smov [#allocation8]  }
0x15c9   :  { %v298_v33 = vpop.permute.xlu1 %297  ;;  %v491_v26 = vpop.permute.xlu0 %490  ;;  %s1820_s19 = sshll.u32 %s2286_s2, 4  ;;  %s1821_s19 = int_to_ptr.vmem [resolvable:$true] %s1820_s19 }
0x15ca   :  { %301 = vst.msk [vmem:[#allocation4 + $0x8] sm:$0xc0] %vm300_vm4, %v298_v33  ;;  %s2253_s20 = scalar_lea.vmem %s1821_s19, 256  ;;  %p2258_p9 = scmp.lt.s32.totalorder %s1821_s19, %s1821_s19 }
0x15cb   :  { %494 = vst.msk [vmem:[#allocation3] sm:$0xc] %vm493_vm5, %v491_v26  ;;  %p2254_p8 = scmp.ne.s32.totalorder %s1821_s19, %s2253_s20  ;;  %p2259_p10 = scmp.lt.s32.totalorder %s2253_s20, %s2253_s20 }
0x15cd   :  { %v497_v1 = vpop.permute.xlu1 %496  ;;  %v691_v31 = vpop.permute.xlu0 %690  ;;  %p2260_p11 = por %p2259_p10, %p2258_p9 }
0x15ce   :  { %500 = vst.msk [vmem:[#allocation4 + $0x8] sm:$0x30] %vm499_vm6, %v497_v1  ;;  %693 = vst.msk [vmem:[#allocation3] sm:$0x30] %vm499_vm6, %v691_v31 }
0x15cf   :  { %p2261_p12 = pnand %p2260_p11, %p2254_p8 }
0x15d1   :  { %v696_v13 = vpop.permute.xlu1 %695  ;;  %v886_v20 = vpop.permute.xlu0 %885 }
0x15d2   :  { %698 = vst.msk [vmem:[#allocation4 + $0x8] sm:$0xc] %vm493_vm5, %v696_v13 }
0x15d3   :  { %888 = vst.msk [vmem:[#allocation3] sm:$0xc0] %vm300_vm4, %v886_v20 }
0x15d5   :  { %v891_v22 = vpop.permute.xlu1 %890  ;;  %v1080_v23 = vpop.permute.xlu0 %1079 }
0x15d6   :  { %893 = vst.msk [vmem:[#allocation4 + $0x8] sm:$0x3] %vm294_vm3, %v891_v22  ;;  %1082 = vst.msk [vmem:[#allocation3 + $0x8] sm:$0x3] %vm294_vm3, %v1080_v23 }
0x15d9   :  { %v1085_v24 = vpop.permute.xlu1 %1084  ;;  %v1277_v25 = vpop.permute.xlu0 %1276 }
0x15da   :  { %1087 = vst.msk [vmem:[#allocation4] sm:$0xc0] %vm300_vm4, %v1085_v24  ;;  %v1678_v35 = vld [vmem:[#allocation3] sm:$0xff] }
0x15db   :  { %1279 = vst.msk [vmem:[#allocation3 + $0x8] sm:$0xc] %vm493_vm5, %v1277_v25 }
0x15dd   :  { %v1282_v27 = vpop.permute.xlu1 %1281  ;;  %v1475_v28 = vpop.permute.xlu0 %1474  ;;  %v1682_v40 = vld [vmem:[#allocation4 + $0x8] sm:$0xff] }
0x15de   :  { %1284 = vst.msk [vmem:[#allocation4] sm:$0x30] %vm499_vm6, %v1282_v27  ;;  %1477 = vst.msk [vmem:[#allocation3 + $0x8] sm:$0x30] %vm499_vm6, %v1475_v28 }
0x15e1   :  { %v1480_v29 = vpop.permute.xlu1 %1479 }
0x15e2   :  { %1482 = vst.msk [vmem:[#allocation4] sm:$0xc] %vm493_vm5, %v1480_v29 }
0x1636   :  { %v1670_v32 = vpop.permute.xlu0 %1669 }
0x1637   :  { %1672 = vst.msk [vmem:[#allocation3 + $0x8] sm:$0xc0] %vm300_vm4, %v1670_v32 }
0x163a   :  { %v1675_v34 = vpop.permute.xlu1 %1674 }
0x163b   :  { %1677 = vst.msk [vmem:[#allocation4] sm:$0x3] %vm294_vm3, %v1675_v34 }
0x163e   :  { %v1679_v36 = vld [vmem:[#allocation3 + $0x8] sm:$0xff] }
0x163f   :  { %v1680_v38 = vpack.c.bf16 %v1679_v36, %v1678_v35 }
0x1641   :  { %2083 = vmatmul.mubr.msk.bf16.vlgmr.msra.gmra.mrb[36].mxu0 %vm140_vm2, %v1680_v38 }
0x1642   :  { %v1681_v39 = vld [vmem:[#allocation4] sm:$0xff] }
0x1643   :  { %v1683_v42 = vpack.c.bf16 %v1682_v40, %v1681_v39 }
0x1645   :  { %2075 = vmatmul.mubr.msk.bf16.vlgmr.msra.gmra.mrb[32].mxu1 %vm140_vm2, %v1683_v42 }
0x1714   :  { %v1797_v43 = vpop.f32.mrb[36].mxu0 }
0x1715   :  { %v2084_v44 = vpop.f32.mrb[37].mxu0 }
0x1716   :  { %v1800_v46 = vpop.f32.mrb[38].mxu0 }
0x1717   :  { %v2085_v47 = vpop.f32.mrb[39].mxu0 }
0x1718   :  { %v1741_v48 = vpop.f32.mrb[32].mxu1 }
0x1719   :  { %v1798_v51 = vadd.f32 %v1797_v43, %v1741_v48  ;;  %v2076_v52 = vpop.f32.mrb[33].mxu1 }
0x171a   :  { %v1744_v53 = vpop.f32.mrb[34].mxu1 }
0x171b   :  { %v1811_v55 = vadd.f32 %v1887_v50, %v1798_v51  ;;  %v1801_v56 = vadd.f32 %v1800_v46, %v1744_v53  ;;  %v2077_v57 = vpop.f32.mrb[35].mxu1 }
0x171d   :  { %1813 = vst.msk [vmem:[#allocation8] sm:$0xff] %vm72_vm1, %v1811_v55  ;;  %v1812_v59 = vadd.f32 %v1887_v50, %v1801_v56 }
0x171f   :  { %1814 = vst.msk [vmem:[#allocation8 + $0x8] sm:$0xff] %vm72_vm1, %v1812_v59 }
0x1720   :  { %2264 = shalt.err (!%p2261_p12)
}
0x1721   :  { %s2265_s22 = scalar_lea.hbm %s2757_s8, 256 }
0x1722   :  { %p2266_p13 = scmp.ne.s32.totalorder %s2757_s8, %s2265_s22  ;;  %p2269_p0 = scmp.lt.u32.totalorder %s2265_s22, %s2757_s8 }
0x1724   :  { %p2271_p1 = pnand %p2269_p0, %p2266_p13 }
0x1726   :  { %2274 = shalt.err (!%p2271_p1)
}
0x1727   :  { %s2287_s26 = smov 128   ;;  %s2288_s27 = smov 8  }
0x1728   :  { %1826 = dma.vmem_to_hbm [thread:$0]  %s1821_s19, 256, %s2757_s8, [#allocation7], %s2287_s26, %s2287_s26, %s2288_s27  }
0x1729   :  { %2277 = dma.done.wait [#allocation7], 256  }
0x172a   :  { %2278 = vsyncadd [#allocation7], 4294967040 }
0x172b   :  { %1830 = vsyncpa [#allocation6], 1 }
0x172c   :  { %1831 = vsyncpa [#allocation7], 1 }

</bundles_post_ra>
